<compile_context>
chip_gen: v7x
topology: tpu7x:2x2x1
jax: 0.10.0
libtpu: 0.0.40
codegen_flags: <defaults>
</compile_context>

<pallas_src>
import functools

import jax
import jax.numpy as jnp
from jax.experimental import pallas as pl
from jax.experimental.pallas import tpu as pltpu

_BN_EPS = 1e-5


# ---------------------------------------------------------------------------
# Pallas kernels
# ---------------------------------------------------------------------------
def _linear_bn_relu_kernel(z_ref, w_ref, b_ref, g_ref, beta_ref, o_ref, *, batch):
    """out = ReLU(BatchNorm1d(z @ W + b))   (training-mode, biased batch stats)."""
    acc = jnp.dot(z_ref[...], w_ref[...], preferred_element_type=jnp.float32)
    acc = acc + b_ref[...]                                    # (B, N) + (1, N)
    inv_n = 1.0 / batch
    mean = jnp.sum(acc, axis=0, keepdims=True) * inv_n        # sublane reduce -> (1, N)
    var = jnp.sum((acc - mean) ** 2, axis=0, keepdims=True) * inv_n
    scale = g_ref[...] * jax.lax.rsqrt(var + _BN_EPS)
    shift = beta_ref[...] - mean * scale
    o_ref[...] = jnp.maximum(acc * scale + shift, 0.0).astype(o_ref.dtype)


def linear_bn_relu(z, w, b, gamma, beta):
    B, K = z.shape
    N = w.shape[1]
    return pl.pallas_call(
        functools.partial(_linear_bn_relu_kernel, batch=float(B)),
        out_shape=jax.ShapeDtypeStruct((B, N), jnp.float32),
        grid=(1,),
        in_specs=[
            pl.BlockSpec((B, K), lambda i: (0, 0)),
            pl.BlockSpec((K, N), lambda i: (0, 0)),
            pl.BlockSpec((1, N), lambda i: (0, 0)),
            pl.BlockSpec((1, N), lambda i: (0, 0)),
            pl.BlockSpec((1, N), lambda i: (0, 0)),
        ],
        out_specs=pl.BlockSpec((B, N), lambda i: (0, 0)),
        compiler_params=pltpu.CompilerParams(dimension_semantics=("arbitrary",)),
    )(z, w, b.reshape(1, N), gamma.reshape(1, N), beta.reshape(1, N))


def _conv_subpixel_kernel(a_ref, w_ref, b_ref, g_ref, beta_ref, o_ref, *,
                          use_bn, act, n_total):
    """Fused sub-pixel ConvT(k=4,s=2,p=1) [+ BatchNorm2d] [+ ReLU/Tanh].

    a_ref: (4, 4*Cin, M)   per-parity transposed patch matrices A_r^T
    w_ref: (4, Cout, 4*Cin) per-parity transposed weights       W_r^T
    o_ref: (4, Cout, M)     lane axis is M = B*H*W  (lane-dense store)
    """
    accs = []
    for r in range(4):                                         # static unroll
        acc = jnp.dot(w_ref[r], a_ref[r], preferred_element_type=jnp.float32)
        accs.append(acc + b_ref[...])                          # (Cout, M) + (Cout, 1)

    if use_bn:
        # BatchNorm2d training-mode stats over all B*OH*OW = 4*M positions/channel.
        inv_n = 1.0 / n_total
        total = accs[0].sum(axis=1, keepdims=True)
        for r in range(1, 4):
            total = total + accs[r].sum(axis=1, keepdims=True)
        mean = total * inv_n                                   # (Cout, 1)
        sq = ((accs[0] - mean) ** 2).sum(axis=1, keepdims=True)
        for r in range(1, 4):
            sq = sq + ((accs[r] - mean) ** 2).sum(axis=1, keepdims=True)
        var = sq * inv_n
        scale = g_ref[...] * jax.lax.rsqrt(var + _BN_EPS)
        shift = beta_ref[...] - mean * scale
        accs = [a * scale + shift for a in accs]

    if act == "relu":
        accs = [jnp.maximum(a, 0.0) for a in accs]
    elif act == "tanh":
        accs = [jnp.tanh(a) for a in accs]

    for r in range(4):
        o_ref[r, :, :] = accs[r].astype(o_ref.dtype)


# ---------------------------------------------------------------------------
# Layer wrappers (glue in plain JAX; all math inside the Pallas kernels)
# ---------------------------------------------------------------------------
def convt_weight_to_subpixel(w_pt):
    """PyTorch ConvT weight (Cin, Cout, 4, 4) -> (4, Cout, 4*Cin) sub-pixel matrices.

    For output parity (ry, rx) and tap offset (dy, dx) in {0,1}^2 the equivalent
    direct-conv tap is W[ci, co, 3-ry-2*dy, 3-rx-2*dx].
    """
    mats = []
    for ry in range(2):
        for rx in range(2):
            rows = []
            for dy in range(2):
                for dx in range(2):
                    rows.append(w_pt[:, :, 3 - ry - 2 * dy, 3 - rx - 2 * dx])  # (Cin,Cout)
            mats.append(jnp.concatenate(rows, axis=0).T)        # (Cout, 4*Cin)
    return jnp.stack(mats, axis=0)                              # (4, Cout, 4*Cin)


def conv_transpose_bn_act(x_nchw, w_sub, b, gamma, beta, *, use_bn, act):
    """ConvTranspose2d(k=4,s=2,p=1) [+BN2d] [+ReLU/Tanh]; NCHW in, NCHW out (2x spatial)."""
    B, Cin, H, W = x_nchw.shape
    Cout = w_sub.shape[1]
    M = B * H * W
    xp = jnp.pad(x_nchw, ((0, 0), (0, 0), (1, 1), (1, 1)))      # zero pad 1 each side

    # Per-parity transposed patch matrices (rows ordered (dy, dx, ci); cols (b, py, px)).
    slabs = []
    for ry in range(2):
        for rx in range(2):
            taps = []
            for dy in range(2):
                for dx in range(2):
                    s = xp[:, :, ry + dy:ry + dy + H, rx + dx:rx + dx + W]  # (B,Cin,H,W)
                    taps.append(jnp.transpose(s, (1, 0, 2, 3)).reshape(Cin, M))
            slabs.append(jnp.concatenate(taps, axis=0))          # (4*Cin, M)
    a = jnp.stack(slabs, axis=0)                                 # (4, 4*Cin, M)

    out = pl.pallas_call(
        functools.partial(_conv_subpixel_kernel, use_bn=use_bn, act=act,
                          n_total=float(4 * M)),
        out_shape=jax.ShapeDtypeStruct((4, Cout, M), jnp.float32),
        grid=(1,),
        in_specs=[
            pl.BlockSpec((4, 4 * Cin, M), lambda i: (0, 0, 0)),
            pl.BlockSpec((4, Cout, 4 * Cin), lambda i: (0, 0, 0)),
            pl.BlockSpec((Cout, 1), lambda i: (0, 0)),
            pl.BlockSpec((Cout, 1), lambda i: (0, 0)),
            pl.BlockSpec((Cout, 1), lambda i: (0, 0)),
        ],
        out_specs=pl.BlockSpec((4, Cout, M), lambda i: (0, 0, 0)),
        compiler_params=pltpu.CompilerParams(dimension_semantics=("arbitrary",)),
    )(a, w_sub, b.reshape(Cout, 1), gamma.reshape(Cout, 1), beta.reshape(Cout, 1))

    # Pixel-shuffle the 4 parities back to NCHW (pure layout plumbing).
    o = out.reshape(2, 2, Cout, B, H, W)                         # (ry, rx, co, b, py, px)
    o = jnp.transpose(o, (3, 2, 4, 0, 5, 1))                     # (b, co, py, ry, px, rx)
    return o.reshape(B, Cout, 2 * H, 2 * W)


# ---------------------------------------------------------------------------
# Generator parameters + forward
# ---------------------------------------------------------------------------
def init_generator_params(key, latent_dim, model_dim):
    md = model_dim
    keys = jax.random.split(key, 8)
    lin_out = 4 * 4 * 4 * md
    p = {}
    p["lin_w"] = 0.02 * jax.random.normal(keys[0], (latent_dim, lin_out), jnp.float32)
    p["lin_b"] = 0.02 * jax.random.normal(keys[1], (lin_out,), jnp.float32)
    p["bn0_g"] = jnp.ones((lin_out,), jnp.float32)
    p["bn0_b"] = jnp.zeros((lin_out,), jnp.float32)
    chans = [(4 * md, 2 * md), (2 * md, md), (md, 1)]
    for i, (ci, co) in enumerate(chans):
        w = 0.02 * jax.random.normal(keys[2 + 2 * i], (ci, co, 4, 4), jnp.float32)
        p[f"w{i}"] = w                                  # PyTorch ConvT layout (reference)
        p[f"w{i}_sub"] = convt_weight_to_subpixel(w)    # pre-laid-out for the kernel
        p[f"b{i}"] = 0.02 * jax.random.normal(keys[3 + 2 * i], (co,), jnp.float32)
        if i < 2:
            p[f"bn{i + 1}_g"] = jnp.ones((co,), jnp.float32)
            p[f"bn{i + 1}_b"] = jnp.zeros((co,), jnp.float32)
    return p


def generator_forward(params, z, *, model_dim):
    md = model_dim
    B = z.shape[0]
    # Linear + BatchNorm1d + ReLU (one fused kernel)
    h = linear_bn_relu(z, params["lin_w"], params["lin_b"],
                       params["bn0_g"], params["bn0_b"])         # (B, 4*4*4*md)
    x = h.reshape(B, 4 * md, 4, 4)                               # NCHW, as in PyTorch
    # ConvT + BN + ReLU : 4x4 -> 8x8
    x = conv_transpose_bn_act(x, params["w0_sub"], params["b0"],
                              params["bn1_g"], params["bn1_b"], use_bn=True, act="relu")
    # ConvT + BN + ReLU : 8x8 -> 16x16
    x = conv_transpose_bn_act(x, params["w1_sub"], params["b1"],
                              params["bn2_g"], params["bn2_b"], use_bn=True, act="relu")
    # ConvT + Tanh      : 16x16 -> 32x32 (Cout = 1)
    one = jnp.ones((1,), jnp.float32)
    zero = jnp.zeros((1,), jnp.float32)
    x = conv_transpose_bn_act(x, params["w2_sub"], params["b2"],
                              one, zero, use_bn=False, act="tanh")
    return x                                                     # (B, 1, 32, 32) NCHW


# ---------------------------------------------------------------------------
# Plain-XLA reference (same semantics) for validation
# ---------------------------------------------------------------------------
def reference_forward(params, z, *, model_dim):
    md = model_dim
    B = z.shape[0]
    hp = jax.lax.Precision.HIGHEST
    h = jnp.dot(z, params["lin_w"], precision=hp) + params["lin_b"]
    mean = jnp.mean(h, axis=0)
    var = jnp.mean((h - mean) ** 2, axis=0)
    h = (h - mean) * jax.lax.rsqrt(var + _BN_EPS) * params["bn0_g"] + params["bn0_b"]
    h = jnp.maximum(h, 0.0)
    x = h.reshape(B, 4 * md, 4, 4)

    def convt(x, w, b):
        rhs = jnp.transpose(jnp.flip(w, (2, 3)), (1, 0, 2, 3))   # OIHW, flipped
        y = jax.lax.conv_general_dilated(
            x, rhs, window_strides=(1, 1), padding=((2, 2), (2, 2)),
            lhs_dilation=(2, 2), rhs_dilation=(1, 1),
            dimension_numbers=("NCHW", "OIHW", "NCHW"), precision=hp)
        return y + b.reshape(1, -1, 1, 1)

    def bn_relu(x, g, bt):
        mean = jnp.mean(x, axis=(0, 2, 3), keepdims=True)
        var = jnp.mean((x - mean) ** 2, axis=(0, 2, 3), keepdims=True)
        xh = (x - mean) * jax.lax.rsqrt(var + _BN_EPS)
        return jnp.maximum(xh * g.reshape(1, -1, 1, 1) + bt.reshape(1, -1, 1, 1), 0.0)

    x = bn_relu(convt(x, params["w0"], params["b0"]), params["bn1_g"], params["bn1_b"])
    x = bn_relu(convt(x, params["w1"], params["b1"]), params["bn2_g"], params["bn2_b"])
    return jnp.tanh(convt(x, params["w2"], params["b2"]))


if __name__ == "__main__":
    latent_dim, model_dim, batch = 32, 8, 2
    key = jax.random.PRNGKey(0)
    pkey, zkey = jax.random.split(key)
    params = init_generator_params(pkey, latent_dim, model_dim)
    z = jax.random.normal(zkey, (batch, latent_dim), jnp.float32)

    fwd = jax.jit(functools.partial(generator_forward, model_dim=model_dim))
    out = jax.block_until_ready(fwd(params, z))

    assert out.shape == (batch, 1, 32, 32), out.shape
    assert out.dtype == jnp.float32
    assert bool(jnp.all(jnp.isfinite(out)))
    assert bool(jnp.all(jnp.abs(out) <= 1.0 + 1e-6))             # tanh range

    ref = jax.block_until_ready(
        jax.jit(functools.partial(reference_forward, model_dim=model_dim))(params, z))
    max_err = float(jnp.max(jnp.abs(out - ref)))
    assert max_err < 2e-2, f"mismatch vs XLA reference: max|diff|={max_err}"
    print("KERNEL_OK")
</pallas_src>

<mosaic_0001>
module attributes {stable_mosaic.version = 11 : i64} {
  func.func @_linear_bn_relu_kernel(%arg0: i32, %arg1: memref<2x32xf32, #tpu.memory_space<vmem>>, %arg2: memref<32x512xf32, #tpu.memory_space<vmem>>, %arg3: memref<1x512xf32, #tpu.memory_space<vmem>>, %arg4: memref<1x512xf32, #tpu.memory_space<vmem>>, %arg5: memref<1x512xf32, #tpu.memory_space<vmem>>, %arg6: memref<2x512xf32, #tpu.memory_space<vmem>>) attributes {dimension_semantics = [#tpu.dimension_semantics<arbitrary>], iteration_bounds = array<i64: 1>, scalar_prefetch = 0 : i64, scratch_operands = 0 : i64, tpu.core_type = #tpu.core_type<tc>, window_params = [{pipeline_mode = #tpu.pipeline_mode<synchronous>, transform_indices = @transform_0, window_bounds = array<i64: 2, 32>}, {pipeline_mode = #tpu.pipeline_mode<synchronous>, transform_indices = @transform_1, window_bounds = array<i64: 32, 512>}, {pipeline_mode = #tpu.pipeline_mode<synchronous>, transform_indices = @transform_2, window_bounds = array<i64: 1, 512>}, {pipeline_mode = #tpu.pipeline_mode<synchronous>, transform_indices = @transform_3, window_bounds = array<i64: 1, 512>}, {pipeline_mode = #tpu.pipeline_mode<synchronous>, transform_indices = @transform_4, window_bounds = array<i64: 1, 512>}, {pipeline_mode = #tpu.pipeline_mode<synchronous>, transform_indices = @transform_5, window_bounds = array<i64: 2, 512>}]} {
    %c0 = arith.constant 0 : index
    %c0_0 = arith.constant 0 : index
    %0 = vector.load %arg1[%c0, %c0_0] : memref<2x32xf32, #tpu.memory_space<vmem>>, vector<2x32xf32>
    %c0_1 = arith.constant 0 : index
    %c0_2 = arith.constant 0 : index
    %1 = vector.load %arg2[%c0_1, %c0_2] : memref<32x512xf32, #tpu.memory_space<vmem>>, vector<32x512xf32>
    %cst = arith.constant dense<0.000000e+00> : vector<2x512xf32>
    %2 = tpu.matmul %0, %1, %cst {dimension_numbers = #tpu.dot_dimension_numbers<[1], [0], [0], [1], [0, 0, 1, 1], [], []>} : vector<2x32xf32>, vector<32x512xf32>, vector<2x512xf32> -> vector<2x512xf32>
    %c0_3 = arith.constant 0 : index
    %c0_4 = arith.constant 0 : index
    %3 = vector.load %arg3[%c0_3, %c0_4] : memref<1x512xf32, #tpu.memory_space<vmem>>, vector<1x512xf32>
    %4 = vector.broadcast %3 : vector<1x512xf32> to vector<2x512xf32>
    %5 = arith.addf %2, %4 : vector<2x512xf32>
    %cst_5 = arith.constant dense<0.000000e+00> : vector<512xf32>
    %6 = vector.multi_reduction <add>, %5, %cst_5 [0] : vector<2x512xf32> to vector<512xf32>
    %7 = vector.shape_cast %6 : vector<512xf32> to vector<1x512xf32>
    %cst_6 = arith.constant 5.000000e-01 : f32
    %8 = vector.broadcast %cst_6 : f32 to vector<1x512xf32>
    %9 = arith.mulf %7, %8 : vector<1x512xf32>
    %10 = vector.broadcast %9 : vector<1x512xf32> to vector<2x512xf32>
    %11 = arith.subf %5, %10 : vector<2x512xf32>
    %12 = arith.mulf %11, %11 : vector<2x512xf32>
    %cst_7 = arith.constant dense<0.000000e+00> : vector<512xf32>
    %13 = vector.multi_reduction <add>, %12, %cst_7 [0] : vector<2x512xf32> to vector<512xf32>
    %14 = vector.shape_cast %13 : vector<512xf32> to vector<1x512xf32>
    %cst_8 = arith.constant 5.000000e-01 : f32
    %15 = vector.broadcast %cst_8 : f32 to vector<1x512xf32>
    %16 = arith.mulf %14, %15 : vector<1x512xf32>
    %c0_9 = arith.constant 0 : index
    %c0_10 = arith.constant 0 : index
    %17 = vector.load %arg4[%c0_9, %c0_10] : memref<1x512xf32, #tpu.memory_space<vmem>>, vector<1x512xf32>
    %cst_11 = arith.constant 9.99999974E-6 : f32
    %18 = vector.broadcast %cst_11 : f32 to vector<1x512xf32>
    %19 = arith.addf %16, %18 : vector<1x512xf32>
    %20 = math.rsqrt %19 : vector<1x512xf32>
    %21 = arith.mulf %17, %20 : vector<1x512xf32>
    %c0_12 = arith.constant 0 : index
    %c0_13 = arith.constant 0 : index
    %22 = vector.load %arg5[%c0_12, %c0_13] : memref<1x512xf32, #tpu.memory_space<vmem>>, vector<1x512xf32>
    %23 = arith.mulf %9, %21 : vector<1x512xf32>
    %24 = arith.subf %22, %23 : vector<1x512xf32>
    %25 = vector.broadcast %21 : vector<1x512xf32> to vector<2x512xf32>
    %26 = arith.mulf %5, %25 : vector<2x512xf32>
    %27 = vector.broadcast %24 : vector<1x512xf32> to vector<2x512xf32>
    %28 = arith.addf %26, %27 : vector<2x512xf32>
    %cst_14 = arith.constant 0.000000e+00 : f32
    %29 = vector.broadcast %cst_14 : f32 to vector<2x512xf32>
    %30 = arith.maximumf %28, %29 : vector<2x512xf32>
    %c0_15 = arith.constant 0 : index
    %c0_16 = arith.constant 0 : index
    %31 = vector.load %arg6[%c0_15, %c0_16] : memref<2x512xf32, #tpu.memory_space<vmem>>, vector<2x512xf32>
    tpu.vector_store %arg6[%c0_15, %c0_16], %30 {strides = array<i32>} : memref<2x512xf32, #tpu.memory_space<vmem>>, vector<2x512xf32>,
    return
  }
  func.func @transform_0(%arg0: i32) -> (i32, i32) {
    %c0_i32 = arith.constant 0 : i32
    %c0_i32_0 = arith.constant 0 : i32
    %c0_i32_1 = arith.constant 0 : i32
    return %c0_i32, %c0_i32_0 : i32, i32
  }
  func.func @transform_1(%arg0: i32) -> (i32, i32) {
    %c0_i32 = arith.constant 0 : i32
    %c0_i32_0 = arith.constant 0 : i32
    %c0_i32_1 = arith.constant 0 : i32
    return %c0_i32, %c0_i32_0 : i32, i32
  }
  func.func @transform_2(%arg0: i32) -> (i32, i32) {
    %c0_i32 = arith.constant 0 : i32
    %c0_i32_0 = arith.constant 0 : i32
    %c0_i32_1 = arith.constant 0 : i32
    return %c0_i32, %c0_i32_0 : i32, i32
  }
  func.func @transform_3(%arg0: i32) -> (i32, i32) {
    %c0_i32 = arith.constant 0 : i32
    %c0_i32_0 = arith.constant 0 : i32
    %c0_i32_1 = arith.constant 0 : i32
    return %c0_i32, %c0_i32_0 : i32, i32
  }
  func.func @transform_4(%arg0: i32) -> (i32, i32) {
    %c0_i32 = arith.constant 0 : i32
    %c0_i32_0 = arith.constant 0 : i32
    %c0_i32_1 = arith.constant 0 : i32
    return %c0_i32, %c0_i32_0 : i32, i32
  }
  func.func @transform_5(%arg0: i32) -> (i32, i32) {
    %c0_i32 = arith.constant 0 : i32
    %c0_i32_0 = arith.constant 0 : i32
    %c0_i32_1 = arith.constant 0 : i32
    return %c0_i32, %c0_i32_0 : i32, i32
  }
}

module attributes {stable_mosaic.version = 11 : i64} {
  func.func @_conv_subpixel_kernel(%arg0: i32, %arg1: memref<4x128x32xf32, #tpu.memory_space<vmem>>, %arg2: memref<4x16x128xf32, #tpu.memory_space<vmem>>, %arg3: memref<16x1xf32, #tpu.memory_space<vmem>>, %arg4: memref<16x1xf32, #tpu.memory_space<vmem>>, %arg5: memref<16x1xf32, #tpu.memory_space<vmem>>, %arg6: memref<4x16x32xf32, #tpu.memory_space<vmem>>) attributes {dimension_semantics = [#tpu.dimension_semantics<arbitrary>], iteration_bounds = array<i64: 1>, scalar_prefetch = 0 : i64, scratch_operands = 0 : i64, tpu.core_type = #tpu.core_type<tc>, window_params = [{pipeline_mode = #tpu.pipeline_mode<synchronous>, transform_indices = @transform_0, window_bounds = array<i64: 4, 128, 32>}, {pipeline_mode = #tpu.pipeline_mode<synchronous>, transform_indices = @transform_1, window_bounds = array<i64: 4, 16, 128>}, {pipeline_mode = #tpu.pipeline_mode<synchronous>, transform_indices = @transform_2, window_bounds = array<i64: 16, 1>}, {pipeline_mode = #tpu.pipeline_mode<synchronous>, transform_indices = @transform_3, window_bounds = array<i64: 16, 1>}, {pipeline_mode = #tpu.pipeline_mode<synchronous>, transform_indices = @transform_4, window_bounds = array<i64: 16, 1>}, {pipeline_mode = #tpu.pipeline_mode<synchronous>, transform_indices = @transform_5, window_bounds = array<i64: 4, 16, 32>}]} {
    %c0 = arith.constant 0 : index
    %c0_0 = arith.constant 0 : index
    %c0_1 = arith.constant 0 : index
    %0 = vector.load %arg2[%c0, %c0_0, %c0_1] : memref<4x16x128xf32, #tpu.memory_space<vmem>>, vector<1x16x128xf32>
    %1 = vector.shape_cast %0 : vector<1x16x128xf32> to vector<16x128xf32>
    %c0_2 = arith.constant 0 : index
    %c0_3 = arith.constant 0 : index
    %c0_4 = arith.constant 0 : index
    %2 = vector.load %arg1[%c0_2, %c0_3, %c0_4] : memref<4x128x32xf32, #tpu.memory_space<vmem>>, vector<1x128x32xf32>
    %3 = vector.shape_cast %2 : vector<1x128x32xf32> to vector<128x32xf32>
    %cst = arith.constant dense<0.000000e+00> : vector<16x32xf32>
    %4 = tpu.matmul %1, %3, %cst {dimension_numbers = #tpu.dot_dimension_numbers<[1], [0], [0], [1], [0, 0, 1, 1], [], []>} : vector<16x128xf32>, vector<128x32xf32>, vector<16x32xf32> -> vector<16x32xf32>
    %c0_5 = arith.constant 0 : index
    %c0_6 = arith.constant 0 : index
    %5 = vector.load %arg3[%c0_5, %c0_6] : memref<16x1xf32, #tpu.memory_space<vmem>>, vector<16x1xf32>
    %6 = vector.broadcast %5 : vector<16x1xf32> to vector<16x32xf32>
    %7 = arith.addf %4, %6 : vector<16x32xf32>
    %c1 = arith.constant 1 : index
    %c0_7 = arith.constant 0 : index
    %c0_8 = arith.constant 0 : index
    %8 = vector.load %arg2[%c1, %c0_7, %c0_8] : memref<4x16x128xf32, #tpu.memory_space<vmem>>, vector<1x16x128xf32>
    %9 = vector.shape_cast %8 : vector<1x16x128xf32> to vector<16x128xf32>
    %c1_9 = arith.constant 1 : index
    %c0_10 = arith.constant 0 : index
    %c0_11 = arith.constant 0 : index
    %10 = vector.load %arg1[%c1_9, %c0_10, %c0_11] : memref<4x128x32xf32, #tpu.memory_space<vmem>>, vector<1x128x32xf32>
    %11 = vector.shape_cast %10 : vector<1x128x32xf32> to vector<128x32xf32>
    %cst_12 = arith.constant dense<0.000000e+00> : vector<16x32xf32>
    %12 = tpu.matmul %9, %11, %cst_12 {dimension_numbers = #tpu.dot_dimension_numbers<[1], [0], [0], [1], [0, 0, 1, 1], [], []>} : vector<16x128xf32>, vector<128x32xf32>, vector<16x32xf32> -> vector<16x32xf32>
    %c0_13 = arith.constant 0 : index
    %c0_14 = arith.constant 0 : index
    %13 = vector.load %arg3[%c0_13, %c0_14] : memref<16x1xf32, #tpu.memory_space<vmem>>, vector<16x1xf32>
    %14 = vector.broadcast %13 : vector<16x1xf32> to vector<16x32xf32>
    %15 = arith.addf %12, %14 : vector<16x32xf32>
    %c2 = arith.constant 2 : index
    %c0_15 = arith.constant 0 : index
    %c0_16 = arith.constant 0 : index
    %16 = vector.load %arg2[%c2, %c0_15, %c0_16] : memref<4x16x128xf32, #tpu.memory_space<vmem>>, vector<1x16x128xf32>
    %17 = vector.shape_cast %16 : vector<1x16x128xf32> to vector<16x128xf32>
    %c2_17 = arith.constant 2 : index
    %c0_18 = arith.constant 0 : index
    %c0_19 = arith.constant 0 : index
    %18 = vector.load %arg1[%c2_17, %c0_18, %c0_19] : memref<4x128x32xf32, #tpu.memory_space<vmem>>, vector<1x128x32xf32>
    %19 = vector.shape_cast %18 : vector<1x128x32xf32> to vector<128x32xf32>
    %cst_20 = arith.constant dense<0.000000e+00> : vector<16x32xf32>
    %20 = tpu.matmul %17, %19, %cst_20 {dimension_numbers = #tpu.dot_dimension_numbers<[1], [0], [0], [1], [0, 0, 1, 1], [], []>} : vector<16x128xf32>, vector<128x32xf32>, vector<16x32xf32> -> vector<16x32xf32>
    %c0_21 = arith.constant 0 : index
    %c0_22 = arith.constant 0 : index
    %21 = vector.load %arg3[%c0_21, %c0_22] : memref<16x1xf32, #tpu.memory_space<vmem>>, vector<16x1xf32>
    %22 = vector.broadcast %21 : vector<16x1xf32> to vector<16x32xf32>
    %23 = arith.addf %20, %22 : vector<16x32xf32>
    %c3 = arith.constant 3 : index
    %c0_23 = arith.constant 0 : index
    %c0_24 = arith.constant 0 : index
    %24 = vector.load %arg2[%c3, %c0_23, %c0_24] : memref<4x16x128xf32, #tpu.memory_space<vmem>>, vector<1x16x128xf32>
    %25 = vector.shape_cast %24 : vector<1x16x128xf32> to vector<16x128xf32>
    %c3_25 = arith.constant 3 : index
    %c0_26 = arith.constant 0 : index
    %c0_27 = arith.constant 0 : index
    %26 = vector.load %arg1[%c3_25, %c0_26, %c0_27] : memref<4x128x32xf32, #tpu.memory_space<vmem>>, vector<1x128x32xf32>
    %27 = vector.shape_cast %26 : vector<1x128x32xf32> to vector<128x32xf32>
    %cst_28 = arith.constant dense<0.000000e+00> : vector<16x32xf32>
    %28 = tpu.matmul %25, %27, %cst_28 {dimension_numbers = #tpu.dot_dimension_numbers<[1], [0], [0], [1], [0, 0, 1, 1], [], []>} : vector<16x128xf32>, vector<128x32xf32>, vector<16x32xf32> -> vector<16x32xf32>
    %c0_29 = arith.constant 0 : index
    %c0_30 = arith.constant 0 : index
    %29 = vector.load %arg3[%c0_29, %c0_30] : memref<16x1xf32, #tpu.memory_space<vmem>>, vector<16x1xf32>
    %30 = vector.broadcast %29 : vector<16x1xf32> to vector<16x32xf32>
    %31 = arith.addf %28, %30 : vector<16x32xf32>
    %cst_31 = arith.constant dense<0.000000e+00> : vector<16xf32>
    %32 = vector.multi_reduction <add>, %7, %cst_31 [1] : vector<16x32xf32> to vector<16xf32>
    %33 = vector.shape_cast %32 : vector<16xf32> to vector<16x1xf32>
    %cst_32 = arith.constant dense<0.000000e+00> : vector<16xf32>
    %34 = vector.multi_reduction <add>, %15, %cst_32 [1] : vector<16x32xf32> to vector<16xf32>
    %35 = vector.shape_cast %34 : vector<16xf32> to vector<16x1xf32>
    %36 = arith.addf %33, %35 : vector<16x1xf32>
    %cst_33 = arith.constant dense<0.000000e+00> : vector<16xf32>
    %37 = vector.multi_reduction <add>, %23, %cst_33 [1] : vector<16x32xf32> to vector<16xf32>
    %38 = vector.shape_cast %37 : vector<16xf32> to vector<16x1xf32>
    %39 = arith.addf %36, %38 : vector<16x1xf32>
    %cst_34 = arith.constant dense<0.000000e+00> : vector<16xf32>
    %40 = vector.multi_reduction <add>, %31, %cst_34 [1] : vector<16x32xf32> to vector<16xf32>
    %41 = vector.shape_cast %40 : vector<16xf32> to vector<16x1xf32>
    %42 = arith.addf %39, %41 : vector<16x1xf32>
    %cst_35 = arith.constant 7.812500e-03 : f32
    %43 = vector.broadcast %cst_35 : f32 to vector<16x1xf32>
    %44 = arith.mulf %42, %43 : vector<16x1xf32>
    %45 = vector.broadcast %44 : vector<16x1xf32> to vector<16x32xf32>
    %46 = arith.subf %7, %45 : vector<16x32xf32>
    %47 = arith.mulf %46, %46 : vector<16x32xf32>
    %cst_36 = arith.constant dense<0.000000e+00> : vector<16xf32>
    %48 = vector.multi_reduction <add>, %47, %cst_36 [1] : vector<16x32xf32> to vector<16xf32>
    %49 = vector.shape_cast %48 : vector<16xf32> to vector<16x1xf32>
    %50 = vector.broadcast %44 : vector<16x1xf32> to vector<16x32xf32>
    %51 = arith.subf %15, %50 : vector<16x32xf32>
    %52 = arith.mulf %51, %51 : vector<16x32xf32>
    %cst_37 = arith.constant dense<0.000000e+00> : vector<16xf32>
    %53 = vector.multi_reduction <add>, %52, %cst_37 [1] : vector<16x32xf32> to vector<16xf32>
    %54 = vector.shape_cast %53 : vector<16xf32> to vector<16x1xf32>
    %55 = arith.addf %49, %54 : vector<16x1xf32>
    %56 = vector.broadcast %44 : vector<16x1xf32> to vector<16x32xf32>
    %57 = arith.subf %23, %56 : vector<16x32xf32>
    %58 = arith.mulf %57, %57 : vector<16x32xf32>
    %cst_38 = arith.constant dense<0.000000e+00> : vector<16xf32>
    %59 = vector.multi_reduction <add>, %58, %cst_38 [1] : vector<16x32xf32> to vector<16xf32>
    %60 = vector.shape_cast %59 : vector<16xf32> to vector<16x1xf32>
    %61 = arith.addf %55, %60 : vector<16x1xf32>
    %62 = vector.broadcast %44 : vector<16x1xf32> to vector<16x32xf32>
    %63 = arith.subf %31, %62 : vector<16x32xf32>
    %64 = arith.mulf %63, %63 : vector<16x32xf32>
    %cst_39 = arith.constant dense<0.000000e+00> : vector<16xf32>
    %65 = vector.multi_reduction <add>, %64, %cst_39 [1] : vector<16x32xf32> to vector<16xf32>
    %66 = vector.shape_cast %65 : vector<16xf32> to vector<16x1xf32>
    %67 = arith.addf %61, %66 : vector<16x1xf32>
    %cst_40 = arith.constant 7.812500e-03 : f32
    %68 = vector.broadcast %cst_40 : f32 to vector<16x1xf32>
    %69 = arith.mulf %67, %68 : vector<16x1xf32>
    %c0_41 = arith.constant 0 : index
    %c0_42 = arith.constant 0 : index
    %70 = vector.load %arg4[%c0_41, %c0_42] : memref<16x1xf32, #tpu.memory_space<vmem>>, vector<16x1xf32>
    %cst_43 = arith.constant 9.99999974E-6 : f32
    %71 = vector.broadcast %cst_43 : f32 to vector<16x1xf32>
    %72 = arith.addf %69, %71 : vector<16x1xf32>
    %73 = math.rsqrt %72 : vector<16x1xf32>
    %74 = arith.mulf %70, %73 : vector<16x1xf32>
    %c0_44 = arith.constant 0 : index
    %c0_45 = arith.constant 0 : index
    %75 = vector.load %arg5[%c0_44, %c0_45] : memref<16x1xf32, #tpu.memory_space<vmem>>, vector<16x1xf32>
    %76 = arith.mulf %44, %74 : vector<16x1xf32>
    %77 = arith.subf %75, %76 : vector<16x1xf32>
    %78 = vector.broadcast %74 : vector<16x1xf32> to vector<16x32xf32>
    %79 = arith.mulf %7, %78 : vector<16x32xf32>
    %80 = vector.broadcast %77 : vector<16x1xf32> to vector<16x32xf32>
    %81 = arith.addf %79, %80 : vector<16x32xf32>
    %82 = vector.broadcast %74 : vector<16x1xf32> to vector<16x32xf32>
    %83 = arith.mulf %15, %82 : vector<16x32xf32>
    %84 = vector.broadcast %77 : vector<16x1xf32> to vector<16x32xf32>
    %85 = arith.addf %83, %84 : vector<16x32xf32>
    %86 = vector.broadcast %74 : vector<16x1xf32> to vector<16x32xf32>
    %87 = arith.mulf %23, %86 : vector<16x32xf32>
    %88 = vector.broadcast %77 : vector<16x1xf32> to vector<16x32xf32>
    %89 = arith.addf %87, %88 : vector<16x32xf32>
    %90 = vector.broadcast %74 : vector<16x1xf32> to vector<16x32xf32>
    %91 = arith.mulf %31, %90 : vector<16x32xf32>
    %92 = vector.broadcast %77 : vector<16x1xf32> to vector<16x32xf32>
    %93 = arith.addf %91, %92 : vector<16x32xf32>
    %cst_46 = arith.constant 0.000000e+00 : f32
    %94 = vector.broadcast %cst_46 : f32 to vector<16x32xf32>
    %95 = arith.maximumf %81, %94 : vector<16x32xf32>
    %cst_47 = arith.constant 0.000000e+00 : f32
    %96 = vector.broadcast %cst_47 : f32 to vector<16x32xf32>
    %97 = arith.maximumf %85, %96 : vector<16x32xf32>
    %cst_48 = arith.constant 0.000000e+00 : f32
    %98 = vector.broadcast %cst_48 : f32 to vector<16x32xf32>
    %99 = arith.maximumf %89, %98 : vector<16x32xf32>
    %cst_49 = arith.constant 0.000000e+00 : f32
    %100 = vector.broadcast %cst_49 : f32 to vector<16x32xf32>
    %101 = arith.maximumf %93, %100 : vector<16x32xf32>
    %c0_50 = arith.constant 0 : index
    %c0_51 = arith.constant 0 : index
    %c0_52 = arith.constant 0 : index
    %102 = vector.load %arg6[%c0_50, %c0_51, %c0_52] : memref<4x16x32xf32, #tpu.memory_space<vmem>>, vector<1x16x32xf32>
    %103 = vector.shape_cast %102 : vector<1x16x32xf32> to vector<16x32xf32>
    %104 = vector.shape_cast %95 : vector<16x32xf32> to vector<1x16x32xf32>
    tpu.vector_store %arg6[%c0_50, %c0_51, %c0_52], %104 {strides = array<i32>} : memref<4x16x32xf32, #tpu.memory_space<vmem>>, vector<1x16x32xf32>,
    %c1_53 = arith.constant 1 : index
    %c0_54 = arith.constant 0 : index
    %c0_55 = arith.constant 0 : index
    %105 = vector.load %arg6[%c1_53, %c0_54, %c0_55] : memref<4x16x32xf32, #tpu.memory_space<vmem>>, vector<1x16x32xf32>
    %106 = vector.shape_cast %105 : vector<1x16x32xf32> to vector<16x32xf32>
    %107 = vector.shape_cast %97 : vector<16x32xf32> to vector<1x16x32xf32>
    tpu.vector_store %arg6[%c1_53, %c0_54, %c0_55], %107 {strides = array<i32>} : memref<4x16x32xf32, #tpu.memory_space<vmem>>, vector<1x16x32xf32>,
    %c2_56 = arith.constant 2 : index
    %c0_57 = arith.constant 0 : index
    %c0_58 = arith.constant 0 : index
    %108 = vector.load %arg6[%c2_56, %c0_57, %c0_58] : memref<4x16x32xf32, #tpu.memory_space<vmem>>, vector<1x16x32xf32>
    %109 = vector.shape_cast %108 : vector<1x16x32xf32> to vector<16x32xf32>
    %110 = vector.shape_cast %99 : vector<16x32xf32> to vector<1x16x32xf32>
    tpu.vector_store %arg6[%c2_56, %c0_57, %c0_58], %110 {strides = array<i32>} : memref<4x16x32xf32, #tpu.memory_space<vmem>>, vector<1x16x32xf32>,
    %c3_59 = arith.constant 3 : index
    %c0_60 = arith.constant 0 : index
    %c0_61 = arith.constant 0 : index
    %111 = vector.load %arg6[%c3_59, %c0_60, %c0_61] : memref<4x16x32xf32, #tpu.memory_space<vmem>>, vector<1x16x32xf32>
    %112 = vector.shape_cast %111 : vector<1x16x32xf32> to vector<16x32xf32>
    %113 = vector.shape_cast %101 : vector<16x32xf32> to vector<1x16x32xf32>
    tpu.vector_store %arg6[%c3_59, %c0_60, %c0_61], %113 {strides = array<i32>} : memref<4x16x32xf32, #tpu.memory_space<vmem>>, vector<1x16x32xf32>,
    return
  }
  func.func @transform_0(%arg0: i32) -> (i32, i32, i32) {
    %c0_i32 = arith.constant 0 : i32
    %c0_i32_0 = arith.constant 0 : i32
    %c0_i32_1 = arith.constant 0 : i32
    %c0_i32_2 = arith.constant 0 : i32
    return %c0_i32, %c0_i32_0, %c0_i32_1 : i32, i32, i32
  }
  func.func @transform_1(%arg0: i32) -> (i32, i32, i32) {
    %c0_i32 = arith.constant 0 : i32
    %c0_i32_0 = arith.constant 0 : i32
    %c0_i32_1 = arith.constant 0 : i32
    %c0_i32_2 = arith.constant 0 : i32
    return %c0_i32, %c0_i32_0, %c0_i32_1 : i32, i32, i32
  }
  func.func @transform_2(%arg0: i32) -> (i32, i32) {
    %c0_i32 = arith.constant 0 : i32
    %c0_i32_0 = arith.constant 0 : i32
    %c0_i32_1 = arith.constant 0 : i32
    return %c0_i32, %c0_i32_0 : i32, i32
  }
  func.func @transform_3(%arg0: i32) -> (i32, i32) {
    %c0_i32 = arith.constant 0 : i32
    %c0_i32_0 = arith.constant 0 : i32
    %c0_i32_1 = arith.constant 0 : i32
    return %c0_i32, %c0_i32_0 : i32, i32
  }
  func.func @transform_4(%arg0: i32) -> (i32, i32) {
    %c0_i32 = arith.constant 0 : i32
    %c0_i32_0 = arith.constant 0 : i32
    %c0_i32_1 = arith.constant 0 : i32
    return %c0_i32, %c0_i32_0 : i32, i32
  }
  func.func @transform_5(%arg0: i32) -> (i32, i32, i32) {
    %c0_i32 = arith.constant 0 : i32
    %c0_i32_0 = arith.constant 0 : i32
    %c0_i32_1 = arith.constant 0 : i32
    %c0_i32_2 = arith.constant 0 : i32
    return %c0_i32, %c0_i32_0, %c0_i32_1 : i32, i32, i32
  }
}

module attributes {stable_mosaic.version = 11 : i64} {
  func.func @_conv_subpixel_kernel(%arg0: i32, %arg1: memref<4x64x128xf32, #tpu.memory_space<vmem>>, %arg2: memref<4x8x64xf32, #tpu.memory_space<vmem>>, %arg3: memref<8x1xf32, #tpu.memory_space<vmem>>, %arg4: memref<8x1xf32, #tpu.memory_space<vmem>>, %arg5: memref<8x1xf32, #tpu.memory_space<vmem>>, %arg6: memref<4x8x128xf32, #tpu.memory_space<vmem>>) attributes {dimension_semantics = [#tpu.dimension_semantics<arbitrary>], iteration_bounds = array<i64: 1>, scalar_prefetch = 0 : i64, scratch_operands = 0 : i64, tpu.core_type = #tpu.core_type<tc>, window_params = [{pipeline_mode = #tpu.pipeline_mode<synchronous>, transform_indices = @transform_0, window_bounds = array<i64: 4, 64, 128>}, {pipeline_mode = #tpu.pipeline_mode<synchronous>, transform_indices = @transform_1, window_bounds = array<i64: 4, 8, 64>}, {pipeline_mode = #tpu.pipeline_mode<synchronous>, transform_indices = @transform_2, window_bounds = array<i64: 8, 1>}, {pipeline_mode = #tpu.pipeline_mode<synchronous>, transform_indices = @transform_3, window_bounds = array<i64: 8, 1>}, {pipeline_mode = #tpu.pipeline_mode<synchronous>, transform_indices = @transform_4, window_bounds = array<i64: 8, 1>}, {pipeline_mode = #tpu.pipeline_mode<synchronous>, transform_indices = @transform_5, window_bounds = array<i64: 4, 8, 128>}]} {
    %c0 = arith.constant 0 : index
    %c0_0 = arith.constant 0 : index
    %c0_1 = arith.constant 0 : index
    %0 = vector.load %arg2[%c0, %c0_0, %c0_1] : memref<4x8x64xf32, #tpu.memory_space<vmem>>, vector<1x8x64xf32>
    %1 = vector.shape_cast %0 : vector<1x8x64xf32> to vector<8x64xf32>
    %c0_2 = arith.constant 0 : index
    %c0_3 = arith.constant 0 : index
    %c0_4 = arith.constant 0 : index
    %2 = vector.load %arg1[%c0_2, %c0_3, %c0_4] : memref<4x64x128xf32, #tpu.memory_space<vmem>>, vector<1x64x128xf32>
    %3 = vector.shape_cast %2 : vector<1x64x128xf32> to vector<64x128xf32>
    %cst = arith.constant dense<0.000000e+00> : vector<8x128xf32>
    %4 = tpu.matmul %1, %3, %cst {dimension_numbers = #tpu.dot_dimension_numbers<[1], [0], [0], [1], [0, 0, 1, 1], [], []>} : vector<8x64xf32>, vector<64x128xf32>, vector<8x128xf32> -> vector<8x128xf32>
    %c0_5 = arith.constant 0 : index
    %c0_6 = arith.constant 0 : index
    %5 = vector.load %arg3[%c0_5, %c0_6] : memref<8x1xf32, #tpu.memory_space<vmem>>, vector<8x1xf32>
    %6 = vector.broadcast %5 : vector<8x1xf32> to vector<8x128xf32>
    %7 = arith.addf %4, %6 : vector<8x128xf32>
    %c1 = arith.constant 1 : index
    %c0_7 = arith.constant 0 : index
    %c0_8 = arith.constant 0 : index
    %8 = vector.load %arg2[%c1, %c0_7, %c0_8] : memref<4x8x64xf32, #tpu.memory_space<vmem>>, vector<1x8x64xf32>
    %9 = vector.shape_cast %8 : vector<1x8x64xf32> to vector<8x64xf32>
    %c1_9 = arith.constant 1 : index
    %c0_10 = arith.constant 0 : index
    %c0_11 = arith.constant 0 : index
    %10 = vector.load %arg1[%c1_9, %c0_10, %c0_11] : memref<4x64x128xf32, #tpu.memory_space<vmem>>, vector<1x64x128xf32>
    %11 = vector.shape_cast %10 : vector<1x64x128xf32> to vector<64x128xf32>
    %cst_12 = arith.constant dense<0.000000e+00> : vector<8x128xf32>
    %12 = tpu.matmul %9, %11, %cst_12 {dimension_numbers = #tpu.dot_dimension_numbers<[1], [0], [0], [1], [0, 0, 1, 1], [], []>} : vector<8x64xf32>, vector<64x128xf32>, vector<8x128xf32> -> vector<8x128xf32>
    %c0_13 = arith.constant 0 : index
    %c0_14 = arith.constant 0 : index
    %13 = vector.load %arg3[%c0_13, %c0_14] : memref<8x1xf32, #tpu.memory_space<vmem>>, vector<8x1xf32>
    %14 = vector.broadcast %13 : vector<8x1xf32> to vector<8x128xf32>
    %15 = arith.addf %12, %14 : vector<8x128xf32>
    %c2 = arith.constant 2 : index
    %c0_15 = arith.constant 0 : index
    %c0_16 = arith.constant 0 : index
    %16 = vector.load %arg2[%c2, %c0_15, %c0_16] : memref<4x8x64xf32, #tpu.memory_space<vmem>>, vector<1x8x64xf32>
    %17 = vector.shape_cast %16 : vector<1x8x64xf32> to vector<8x64xf32>
    %c2_17 = arith.constant 2 : index
    %c0_18 = arith.constant 0 : index
    %c0_19 = arith.constant 0 : index
    %18 = vector.load %arg1[%c2_17, %c0_18, %c0_19] : memref<4x64x128xf32, #tpu.memory_space<vmem>>, vector<1x64x128xf32>
    %19 = vector.shape_cast %18 : vector<1x64x128xf32> to vector<64x128xf32>
    %cst_20 = arith.constant dense<0.000000e+00> : vector<8x128xf32>
    %20 = tpu.matmul %17, %19, %cst_20 {dimension_numbers = #tpu.dot_dimension_numbers<[1], [0], [0], [1], [0, 0, 1, 1], [], []>} : vector<8x64xf32>, vector<64x128xf32>, vector<8x128xf32> -> vector<8x128xf32>
    %c0_21 = arith.constant 0 : index
    %c0_22 = arith.constant 0 : index
    %21 = vector.load %arg3[%c0_21, %c0_22] : memref<8x1xf32, #tpu.memory_space<vmem>>, vector<8x1xf32>
    %22 = vector.broadcast %21 : vector<8x1xf32> to vector<8x128xf32>
    %23 = arith.addf %20, %22 : vector<8x128xf32>
    %c3 = arith.constant 3 : index
    %c0_23 = arith.constant 0 : index
    %c0_24 = arith.constant 0 : index
    %24 = vector.load %arg2[%c3, %c0_23, %c0_24] : memref<4x8x64xf32, #tpu.memory_space<vmem>>, vector<1x8x64xf32>
    %25 = vector.shape_cast %24 : vector<1x8x64xf32> to vector<8x64xf32>
    %c3_25 = arith.constant 3 : index
    %c0_26 = arith.constant 0 : index
    %c0_27 = arith.constant 0 : index
    %26 = vector.load %arg1[%c3_25, %c0_26, %c0_27] : memref<4x64x128xf32, #tpu.memory_space<vmem>>, vector<1x64x128xf32>
    %27 = vector.shape_cast %26 : vector<1x64x128xf32> to vector<64x128xf32>
    %cst_28 = arith.constant dense<0.000000e+00> : vector<8x128xf32>
    %28 = tpu.matmul %25, %27, %cst_28 {dimension_numbers = #tpu.dot_dimension_numbers<[1], [0], [0], [1], [0, 0, 1, 1], [], []>} : vector<8x64xf32>, vector<64x128xf32>, vector<8x128xf32> -> vector<8x128xf32>
    %c0_29 = arith.constant 0 : index
    %c0_30 = arith.constant 0 : index
    %29 = vector.load %arg3[%c0_29, %c0_30] : memref<8x1xf32, #tpu.memory_space<vmem>>, vector<8x1xf32>
    %30 = vector.broadcast %29 : vector<8x1xf32> to vector<8x128xf32>
    %31 = arith.addf %28, %30 : vector<8x128xf32>
    %cst_31 = arith.constant dense<0.000000e+00> : vector<8xf32>
    %32 = vector.multi_reduction <add>, %7, %cst_31 [1] : vector<8x128xf32> to vector<8xf32>
    %33 = vector.shape_cast %32 : vector<8xf32> to vector<8x1xf32>
    %cst_32 = arith.constant dense<0.000000e+00> : vector<8xf32>
    %34 = vector.multi_reduction <add>, %15, %cst_32 [1] : vector<8x128xf32> to vector<8xf32>
    %35 = vector.shape_cast %34 : vector<8xf32> to vector<8x1xf32>
    %36 = arith.addf %33, %35 : vector<8x1xf32>
    %cst_33 = arith.constant dense<0.000000e+00> : vector<8xf32>
    %37 = vector.multi_reduction <add>, %23, %cst_33 [1] : vector<8x128xf32> to vector<8xf32>
    %38 = vector.shape_cast %37 : vector<8xf32> to vector<8x1xf32>
    %39 = arith.addf %36, %38 : vector<8x1xf32>
    %cst_34 = arith.constant dense<0.000000e+00> : vector<8xf32>
    %40 = vector.multi_reduction <add>, %31, %cst_34 [1] : vector<8x128xf32> to vector<8xf32>
    %41 = vector.shape_cast %40 : vector<8xf32> to vector<8x1xf32>
    %42 = arith.addf %39, %41 : vector<8x1xf32>
    %cst_35 = arith.constant 0.001953125 : f32
    %43 = vector.broadcast %cst_35 : f32 to vector<8x1xf32>
    %44 = arith.mulf %42, %43 : vector<8x1xf32>
    %45 = vector.broadcast %44 : vector<8x1xf32> to vector<8x128xf32>
    %46 = arith.subf %7, %45 : vector<8x128xf32>
    %47 = arith.mulf %46, %46 : vector<8x128xf32>
    %cst_36 = arith.constant dense<0.000000e+00> : vector<8xf32>
    %48 = vector.multi_reduction <add>, %47, %cst_36 [1] : vector<8x128xf32> to vector<8xf32>
    %49 = vector.shape_cast %48 : vector<8xf32> to vector<8x1xf32>
    %50 = vector.broadcast %44 : vector<8x1xf32> to vector<8x128xf32>
    %51 = arith.subf %15, %50 : vector<8x128xf32>
    %52 = arith.mulf %51, %51 : vector<8x128xf32>
    %cst_37 = arith.constant dense<0.000000e+00> : vector<8xf32>
    %53 = vector.multi_reduction <add>, %52, %cst_37 [1] : vector<8x128xf32> to vector<8xf32>
    %54 = vector.shape_cast %53 : vector<8xf32> to vector<8x1xf32>
    %55 = arith.addf %49, %54 : vector<8x1xf32>
    %56 = vector.broadcast %44 : vector<8x1xf32> to vector<8x128xf32>
    %57 = arith.subf %23, %56 : vector<8x128xf32>
    %58 = arith.mulf %57, %57 : vector<8x128xf32>
    %cst_38 = arith.constant dense<0.000000e+00> : vector<8xf32>
    %59 = vector.multi_reduction <add>, %58, %cst_38 [1] : vector<8x128xf32> to vector<8xf32>
    %60 = vector.shape_cast %59 : vector<8xf32> to vector<8x1xf32>
    %61 = arith.addf %55, %60 : vector<8x1xf32>
    %62 = vector.broadcast %44 : vector<8x1xf32> to vector<8x128xf32>
    %63 = arith.subf %31, %62 : vector<8x128xf32>
    %64 = arith.mulf %63, %63 : vector<8x128xf32>
    %cst_39 = arith.constant dense<0.000000e+00> : vector<8xf32>
    %65 = vector.multi_reduction <add>, %64, %cst_39 [1] : vector<8x128xf32> to vector<8xf32>
    %66 = vector.shape_cast %65 : vector<8xf32> to vector<8x1xf32>
    %67 = arith.addf %61, %66 : vector<8x1xf32>
    %cst_40 = arith.constant 0.001953125 : f32
    %68 = vector.broadcast %cst_40 : f32 to vector<8x1xf32>
    %69 = arith.mulf %67, %68 : vector<8x1xf32>
    %c0_41 = arith.constant 0 : index
    %c0_42 = arith.constant 0 : index
    %70 = vector.load %arg4[%c0_41, %c0_42] : memref<8x1xf32, #tpu.memory_space<vmem>>, vector<8x1xf32>
    %cst_43 = arith.constant 9.99999974E-6 : f32
    %71 = vector.broadcast %cst_43 : f32 to vector<8x1xf32>
    %72 = arith.addf %69, %71 : vector<8x1xf32>
    %73 = math.rsqrt %72 : vector<8x1xf32>
    %74 = arith.mulf %70, %73 : vector<8x1xf32>
    %c0_44 = arith.constant 0 : index
    %c0_45 = arith.constant 0 : index
    %75 = vector.load %arg5[%c0_44, %c0_45] : memref<8x1xf32, #tpu.memory_space<vmem>>, vector<8x1xf32>
    %76 = arith.mulf %44, %74 : vector<8x1xf32>
    %77 = arith.subf %75, %76 : vector<8x1xf32>
    %78 = vector.broadcast %74 : vector<8x1xf32> to vector<8x128xf32>
    %79 = arith.mulf %7, %78 : vector<8x128xf32>
    %80 = vector.broadcast %77 : vector<8x1xf32> to vector<8x128xf32>
    %81 = arith.addf %79, %80 : vector<8x128xf32>
    %82 = vector.broadcast %74 : vector<8x1xf32> to vector<8x128xf32>
    %83 = arith.mulf %15, %82 : vector<8x128xf32>
    %84 = vector.broadcast %77 : vector<8x1xf32> to vector<8x128xf32>
    %85 = arith.addf %83, %84 : vector<8x128xf32>
    %86 = vector.broadcast %74 : vector<8x1xf32> to vector<8x128xf32>
    %87 = arith.mulf %23, %86 : vector<8x128xf32>
    %88 = vector.broadcast %77 : vector<8x1xf32> to vector<8x128xf32>
    %89 = arith.addf %87, %88 : vector<8x128xf32>
    %90 = vector.broadcast %74 : vector<8x1xf32> to vector<8x128xf32>
    %91 = arith.mulf %31, %90 : vector<8x128xf32>
    %92 = vector.broadcast %77 : vector<8x1xf32> to vector<8x128xf32>
    %93 = arith.addf %91, %92 : vector<8x128xf32>
    %cst_46 = arith.constant 0.000000e+00 : f32
    %94 = vector.broadcast %cst_46 : f32 to vector<8x128xf32>
    %95 = arith.maximumf %81, %94 : vector<8x128xf32>
    %cst_47 = arith.constant 0.000000e+00 : f32
    %96 = vector.broadcast %cst_47 : f32 to vector<8x128xf32>
    %97 = arith.maximumf %85, %96 : vector<8x128xf32>
    %cst_48 = arith.constant 0.000000e+00 : f32
    %98 = vector.broadcast %cst_48 : f32 to vector<8x128xf32>
    %99 = arith.maximumf %89, %98 : vector<8x128xf32>
    %cst_49 = arith.constant 0.000000e+00 : f32
    %100 = vector.broadcast %cst_49 : f32 to vector<8x128xf32>
    %101 = arith.maximumf %93, %100 : vector<8x128xf32>
    %c0_50 = arith.constant 0 : index
    %c0_51 = arith.constant 0 : index
    %c0_52 = arith.constant 0 : index
    %102 = vector.load %arg6[%c0_50, %c0_51, %c0_52] : memref<4x8x128xf32, #tpu.memory_space<vmem>>, vector<1x8x128xf32>
    %103 = vector.shape_cast %102 : vector<1x8x128xf32> to vector<8x128xf32>
    %104 = vector.shape_cast %95 : vector<8x128xf32> to vector<1x8x128xf32>
    tpu.vector_store %arg6[%c0_50, %c0_51, %c0_52], %104 {strides = array<i32>} : memref<4x8x128xf32, #tpu.memory_space<vmem>>, vector<1x8x128xf32>,
    %c1_53 = arith.constant 1 : index
    %c0_54 = arith.constant 0 : index
    %c0_55 = arith.constant 0 : index
    %105 = vector.load %arg6[%c1_53, %c0_54, %c0_55] : memref<4x8x128xf32, #tpu.memory_space<vmem>>, vector<1x8x128xf32>
    %106 = vector.shape_cast %105 : vector<1x8x128xf32> to vector<8x128xf32>
    %107 = vector.shape_cast %97 : vector<8x128xf32> to vector<1x8x128xf32>
    tpu.vector_store %arg6[%c1_53, %c0_54, %c0_55], %107 {strides = array<i32>} : memref<4x8x128xf32, #tpu.memory_space<vmem>>, vector<1x8x128xf32>,
    %c2_56 = arith.constant 2 : index
    %c0_57 = arith.constant 0 : index
    %c0_58 = arith.constant 0 : index
    %108 = vector.load %arg6[%c2_56, %c0_57, %c0_58] : memref<4x8x128xf32, #tpu.memory_space<vmem>>, vector<1x8x128xf32>
    %109 = vector.shape_cast %108 : vector<1x8x128xf32> to vector<8x128xf32>
    %110 = vector.shape_cast %99 : vector<8x128xf32> to vector<1x8x128xf32>
    tpu.vector_store %arg6[%c2_56, %c0_57, %c0_58], %110 {strides = array<i32>} : memref<4x8x128xf32, #tpu.memory_space<vmem>>, vector<1x8x128xf32>,
    %c3_59 = arith.constant 3 : index
    %c0_60 = arith.constant 0 : index
    %c0_61 = arith.constant 0 : index
    %111 = vector.load %arg6[%c3_59, %c0_60, %c0_61] : memref<4x8x128xf32, #tpu.memory_space<vmem>>, vector<1x8x128xf32>
    %112 = vector.shape_cast %111 : vector<1x8x128xf32> to vector<8x128xf32>
    %113 = vector.shape_cast %101 : vector<8x128xf32> to vector<1x8x128xf32>
    tpu.vector_store %arg6[%c3_59, %c0_60, %c0_61], %113 {strides = array<i32>} : memref<4x8x128xf32, #tpu.memory_space<vmem>>, vector<1x8x128xf32>,
    return
  }
  func.func @transform_0(%arg0: i32) -> (i32, i32, i32) {
    %c0_i32 = arith.constant 0 : i32
    %c0_i32_0 = arith.constant 0 : i32
    %c0_i32_1 = arith.constant 0 : i32
    %c0_i32_2 = arith.constant 0 : i32
    return %c0_i32, %c0_i32_0, %c0_i32_1 : i32, i32, i32
  }
  func.func @transform_1(%arg0: i32) -> (i32, i32, i32) {
    %c0_i32 = arith.constant 0 : i32
    %c0_i32_0 = arith.constant 0 : i32
    %c0_i32_1 = arith.constant 0 : i32
    %c0_i32_2 = arith.constant 0 : i32
    return %c0_i32, %c0_i32_0, %c0_i32_1 : i32, i32, i32
  }
  func.func @transform_2(%arg0: i32) -> (i32, i32) {
    %c0_i32 = arith.constant 0 : i32
    %c0_i32_0 = arith.constant 0 : i32
    %c0_i32_1 = arith.constant 0 : i32
    return %c0_i32, %c0_i32_0 : i32, i32
  }
  func.func @transform_3(%arg0: i32) -> (i32, i32) {
    %c0_i32 = arith.constant 0 : i32
    %c0_i32_0 = arith.constant 0 : i32
    %c0_i32_1 = arith.constant 0 : i32
    return %c0_i32, %c0_i32_0 : i32, i32
  }
  func.func @transform_4(%arg0: i32) -> (i32, i32) {
    %c0_i32 = arith.constant 0 : i32
    %c0_i32_0 = arith.constant 0 : i32
    %c0_i32_1 = arith.constant 0 : i32
    return %c0_i32, %c0_i32_0 : i32, i32
  }
  func.func @transform_5(%arg0: i32) -> (i32, i32, i32) {
    %c0_i32 = arith.constant 0 : i32
    %c0_i32_0 = arith.constant 0 : i32
    %c0_i32_1 = arith.constant 0 : i32
    %c0_i32_2 = arith.constant 0 : i32
    return %c0_i32, %c0_i32_0, %c0_i32_1 : i32, i32, i32
  }
}

module attributes {stable_mosaic.version = 11 : i64} {
  func.func @_conv_subpixel_kernel(%arg0: i32, %arg1: memref<4x32x512xf32, #tpu.memory_space<vmem>>, %arg2: memref<4x1x32xf32, #tpu.memory_space<vmem>>, %arg3: memref<1x1xf32, #tpu.memory_space<vmem>>, %arg4: memref<1x1xf32, #tpu.memory_space<vmem>>, %arg5: memref<1x1xf32, #tpu.memory_space<vmem>>, %arg6: memref<4x1x512xf32, #tpu.memory_space<vmem>>) attributes {dimension_semantics = [#tpu.dimension_semantics<arbitrary>], iteration_bounds = array<i64: 1>, scalar_prefetch = 0 : i64, scratch_operands = 0 : i64, tpu.core_type = #tpu.core_type<tc>, window_params = [{pipeline_mode = #tpu.pipeline_mode<synchronous>, transform_indices = @transform_0, window_bounds = array<i64: 4, 32, 512>}, {pipeline_mode = #tpu.pipeline_mode<synchronous>, transform_indices = @transform_1, window_bounds = array<i64: 4, 1, 32>}, {pipeline_mode = #tpu.pipeline_mode<synchronous>, transform_indices = @transform_2, window_bounds = array<i64: 1, 1>}, {pipeline_mode = #tpu.pipeline_mode<synchronous>, transform_indices = @transform_3, window_bounds = array<i64: 1, 1>}, {pipeline_mode = #tpu.pipeline_mode<synchronous>, transform_indices = @transform_4, window_bounds = array<i64: 1, 1>}, {pipeline_mode = #tpu.pipeline_mode<synchronous>, transform_indices = @transform_5, window_bounds = array<i64: 4, 1, 512>}]} {
    %c0 = arith.constant 0 : index
    %c0_0 = arith.constant 0 : index
    %c0_1 = arith.constant 0 : index
    %0 = vector.load %arg2[%c0, %c0_0, %c0_1] : memref<4x1x32xf32, #tpu.memory_space<vmem>>, vector<1x1x32xf32>
    %1 = vector.shape_cast %0 : vector<1x1x32xf32> to vector<1x32xf32>
    %c0_2 = arith.constant 0 : index
    %c0_3 = arith.constant 0 : index
    %c0_4 = arith.constant 0 : index
    %2 = vector.load %arg1[%c0_2, %c0_3, %c0_4] : memref<4x32x512xf32, #tpu.memory_space<vmem>>, vector<1x32x512xf32>
    %3 = vector.shape_cast %2 : vector<1x32x512xf32> to vector<32x512xf32>
    %cst = arith.constant dense<0.000000e+00> : vector<1x512xf32>
    %4 = tpu.matmul %1, %3, %cst {dimension_numbers = #tpu.dot_dimension_numbers<[1], [0], [0], [1], [0, 0, 1, 1], [], []>} : vector<1x32xf32>, vector<32x512xf32>, vector<1x512xf32> -> vector<1x512xf32>
    %c0_5 = arith.constant 0 : index
    %c0_6 = arith.constant 0 : index
    %5 = vector.load %arg3[%c0_5, %c0_6] : memref<1x1xf32, #tpu.memory_space<vmem>>, vector<1x1xf32>
    %6 = vector.broadcast %5 : vector<1x1xf32> to vector<1x512xf32>
    %7 = arith.addf %4, %6 : vector<1x512xf32>
    %c1 = arith.constant 1 : index
    %c0_7 = arith.constant 0 : index
    %c0_8 = arith.constant 0 : index
    %8 = vector.load %arg2[%c1, %c0_7, %c0_8] : memref<4x1x32xf32, #tpu.memory_space<vmem>>, vector<1x1x32xf32>
    %9 = vector.shape_cast %8 : vector<1x1x32xf32> to vector<1x32xf32>
    %c1_9 = arith.constant 1 : index
    %c0_10 = arith.constant 0 : index
    %c0_11 = arith.constant 0 : index
    %10 = vector.load %arg1[%c1_9, %c0_10, %c0_11] : memref<4x32x512xf32, #tpu.memory_space<vmem>>, vector<1x32x512xf32>
    %11 = vector.shape_cast %10 : vector<1x32x512xf32> to vector<32x512xf32>
    %cst_12 = arith.constant dense<0.000000e+00> : vector<1x512xf32>
    %12 = tpu.matmul %9, %11, %cst_12 {dimension_numbers = #tpu.dot_dimension_numbers<[1], [0], [0], [1], [0, 0, 1, 1], [], []>} : vector<1x32xf32>, vector<32x512xf32>, vector<1x512xf32> -> vector<1x512xf32>
    %c0_13 = arith.constant 0 : index
    %c0_14 = arith.constant 0 : index
    %13 = vector.load %arg3[%c0_13, %c0_14] : memref<1x1xf32, #tpu.memory_space<vmem>>, vector<1x1xf32>
    %14 = vector.broadcast %13 : vector<1x1xf32> to vector<1x512xf32>
    %15 = arith.addf %12, %14 : vector<1x512xf32>
    %c2 = arith.constant 2 : index
    %c0_15 = arith.constant 0 : index
    %c0_16 = arith.constant 0 : index
    %16 = vector.load %arg2[%c2, %c0_15, %c0_16] : memref<4x1x32xf32, #tpu.memory_space<vmem>>, vector<1x1x32xf32>
    %17 = vector.shape_cast %16 : vector<1x1x32xf32> to vector<1x32xf32>
    %c2_17 = arith.constant 2 : index
    %c0_18 = arith.constant 0 : index
    %c0_19 = arith.constant 0 : index
    %18 = vector.load %arg1[%c2_17, %c0_18, %c0_19] : memref<4x32x512xf32, #tpu.memory_space<vmem>>, vector<1x32x512xf32>
    %19 = vector.shape_cast %18 : vector<1x32x512xf32> to vector<32x512xf32>
    %cst_20 = arith.constant dense<0.000000e+00> : vector<1x512xf32>
    %20 = tpu.matmul %17, %19, %cst_20 {dimension_numbers = #tpu.dot_dimension_numbers<[1], [0], [0], [1], [0, 0, 1, 1], [], []>} : vector<1x32xf32>, vector<32x512xf32>, vector<1x512xf32> -> vector<1x512xf32>
    %c0_21 = arith.constant 0 : index
    %c0_22 = arith.constant 0 : index
    %21 = vector.load %arg3[%c0_21, %c0_22] : memref<1x1xf32, #tpu.memory_space<vmem>>, vector<1x1xf32>
    %22 = vector.broadcast %21 : vector<1x1xf32> to vector<1x512xf32>
    %23 = arith.addf %20, %22 : vector<1x512xf32>
    %c3 = arith.constant 3 : index
    %c0_23 = arith.constant 0 : index
    %c0_24 = arith.constant 0 : index
    %24 = vector.load %arg2[%c3, %c0_23, %c0_24] : memref<4x1x32xf32, #tpu.memory_space<vmem>>, vector<1x1x32xf32>
    %25 = vector.shape_cast %24 : vector<1x1x32xf32> to vector<1x32xf32>
    %c3_25 = arith.constant 3 : index
    %c0_26 = arith.constant 0 : index
    %c0_27 = arith.constant 0 : index
    %26 = vector.load %arg1[%c3_25, %c0_26, %c0_27] : memref<4x32x512xf32, #tpu.memory_space<vmem>>, vector<1x32x512xf32>
    %27 = vector.shape_cast %26 : vector<1x32x512xf32> to vector<32x512xf32>
    %cst_28 = arith.constant dense<0.000000e+00> : vector<1x512xf32>
    %28 = tpu.matmul %25, %27, %cst_28 {dimension_numbers = #tpu.dot_dimension_numbers<[1], [0], [0], [1], [0, 0, 1, 1], [], []>} : vector<1x32xf32>, vector<32x512xf32>, vector<1x512xf32> -> vector<1x512xf32>
    %c0_29 = arith.constant 0 : index
    %c0_30 = arith.constant 0 : index
    %29 = vector.load %arg3[%c0_29, %c0_30] : memref<1x1xf32, #tpu.memory_space<vmem>>, vector<1x1xf32>
    %30 = vector.broadcast %29 : vector<1x1xf32> to vector<1x512xf32>
    %31 = arith.addf %28, %30 : vector<1x512xf32>
    %32 = math.tanh %7 : vector<1x512xf32>
    %33 = math.tanh %15 : vector<1x512xf32>
    %34 = math.tanh %23 : vector<1x512xf32>
    %35 = math.tanh %31 : vector<1x512xf32>
    %c0_31 = arith.constant 0 : index
    %c0_32 = arith.constant 0 : index
    %c0_33 = arith.constant 0 : index
    %36 = vector.load %arg6[%c0_31, %c0_32, %c0_33] : memref<4x1x512xf32, #tpu.memory_space<vmem>>, vector<1x1x512xf32>
    %37 = vector.shape_cast %36 : vector<1x1x512xf32> to vector<1x512xf32>
    %38 = vector.shape_cast %32 : vector<1x512xf32> to vector<1x1x512xf32>
    tpu.vector_store %arg6[%c0_31, %c0_32, %c0_33], %38 {strides = array<i32>} : memref<4x1x512xf32, #tpu.memory_space<vmem>>, vector<1x1x512xf32>,
    %c1_34 = arith.constant 1 : index
    %c0_35 = arith.constant 0 : index
    %c0_36 = arith.constant 0 : index
    %39 = vector.load %arg6[%c1_34, %c0_35, %c0_36] : memref<4x1x512xf32, #tpu.memory_space<vmem>>, vector<1x1x512xf32>
    %40 = vector.shape_cast %39 : vector<1x1x512xf32> to vector<1x512xf32>
    %41 = vector.shape_cast %33 : vector<1x512xf32> to vector<1x1x512xf32>
    tpu.vector_store %arg6[%c1_34, %c0_35, %c0_36], %41 {strides = array<i32>} : memref<4x1x512xf32, #tpu.memory_space<vmem>>, vector<1x1x512xf32>,
    %c2_37 = arith.constant 2 : index
    %c0_38 = arith.constant 0 : index
    %c0_39 = arith.constant 0 : index
    %42 = vector.load %arg6[%c2_37, %c0_38, %c0_39] : memref<4x1x512xf32, #tpu.memory_space<vmem>>, vector<1x1x512xf32>
    %43 = vector.shape_cast %42 : vector<1x1x512xf32> to vector<1x512xf32>
    %44 = vector.shape_cast %34 : vector<1x512xf32> to vector<1x1x512xf32>
    tpu.vector_store %arg6[%c2_37, %c0_38, %c0_39], %44 {strides = array<i32>} : memref<4x1x512xf32, #tpu.memory_space<vmem>>, vector<1x1x512xf32>,
    %c3_40 = arith.constant 3 : index
    %c0_41 = arith.constant 0 : index
    %c0_42 = arith.constant 0 : index
    %45 = vector.load %arg6[%c3_40, %c0_41, %c0_42] : memref<4x1x512xf32, #tpu.memory_space<vmem>>, vector<1x1x512xf32>
    %46 = vector.shape_cast %45 : vector<1x1x512xf32> to vector<1x512xf32>
    %47 = vector.shape_cast %35 : vector<1x512xf32> to vector<1x1x512xf32>
    tpu.vector_store %arg6[%c3_40, %c0_41, %c0_42], %47 {strides = array<i32>} : memref<4x1x512xf32, #tpu.memory_space<vmem>>, vector<1x1x512xf32>,
    return
  }
  func.func @transform_0(%arg0: i32) -> (i32, i32, i32) {
    %c0_i32 = arith.constant 0 : i32
    %c0_i32_0 = arith.constant 0 : i32
    %c0_i32_1 = arith.constant 0 : i32
    %c0_i32_2 = arith.constant 0 : i32
    return %c0_i32, %c0_i32_0, %c0_i32_1 : i32, i32, i32
  }
  func.func @transform_1(%arg0: i32) -> (i32, i32, i32) {
    %c0_i32 = arith.constant 0 : i32
    %c0_i32_0 = arith.constant 0 : i32
    %c0_i32_1 = arith.constant 0 : i32
    %c0_i32_2 = arith.constant 0 : i32
    return %c0_i32, %c0_i32_0, %c0_i32_1 : i32, i32, i32
  }
  func.func @transform_2(%arg0: i32) -> (i32, i32) {
    %c0_i32 = arith.constant 0 : i32
    %c0_i32_0 = arith.constant 0 : i32
    %c0_i32_1 = arith.constant 0 : i32
    return %c0_i32, %c0_i32_0 : i32, i32
  }
  func.func @transform_3(%arg0: i32) -> (i32, i32) {
    %c0_i32 = arith.constant 0 : i32
    %c0_i32_0 = arith.constant 0 : i32
    %c0_i32_1 = arith.constant 0 : i32
    return %c0_i32, %c0_i32_0 : i32, i32
  }
  func.func @transform_4(%arg0: i32) -> (i32, i32) {
    %c0_i32 = arith.constant 0 : i32
    %c0_i32_0 = arith.constant 0 : i32
    %c0_i32_1 = arith.constant 0 : i32
    return %c0_i32, %c0_i32_0 : i32, i32
  }
  func.func @transform_5(%arg0: i32) -> (i32, i32, i32) {
    %c0_i32 = arith.constant 0 : i32
    %c0_i32_0 = arith.constant 0 : i32
    %c0_i32_1 = arith.constant 0 : i32
    %c0_i32_2 = arith.constant 0 : i32
    return %c0_i32, %c0_i32_0, %c0_i32_1 : i32, i32, i32
  }
}

</mosaic_0001>

<bundles_post_ra>
// kernel: generator_forward.4
= control target key start
LH: loop header
LB: loop body
LE: loop exit
PB: predicated region body
PF: predicated region fallthrough
CT: control target
= control target key end

     0   :  { %10 = vsyncpa [#allocation3], 0  ;;  %s504_s18 = smov [#allocation2]   ;;  %s639_s0 = inlined_call_operand.vmem [shape: f32[2,32], index: 0, kind: input, shape index: {}]   ;;  %s640_s1 = inlined_call_operand.hbm [shape: f32[32,512], index: 1, kind: input, shape index: {}]   ;;  %s641_s2 = inlined_call_operand.vmem [shape: f32[1,512], index: 2, kind: input, shape index: {}]   ;;  %s642_s3 = inlined_call_operand.vmem [shape: f32[1,512], index: 3, kind: input, shape index: {}]   ;;  %s643_s4 = inlined_call_operand.vmem [shape: f32[1,512], index: 4, kind: input, shape index: {}]   ;;  %s644_s5 = inlined_call_operand.vmem [shape: f32[2,512], index: 5, kind: output, shape index: {}]  }
   0x1   :  { %s18_s19 = sshll.u32 %s504_s18, 4  ;;  %s480_s22 = scalar_lea.hbm %s640_s1, 2048  ;;  %s19_s19 = int_to_ptr.vmem [resolvable:$true] %s18_s19 }
   0x2   :  { %p481_p0 = scmp.ne.s32.totalorder %s640_s1, %s480_s22  ;;  %p484_p1 = scmp.lt.u32.totalorder %s480_s22, %s640_s1 }
   0x4   :  { %p486_p2 = pnand %p484_p1, %p481_p0 }
   0x6   :  { %489 = shalt.err (!%p486_p2)
}
   0x7   :  { %s490_s27 = scalar_lea.vmem %s19_s19, 2048  ;;  %p495_p4 = scmp.lt.s32.totalorder %s19_s19, %s19_s19 }
   0x8   :  { %p491_p3 = scmp.ne.s32.totalorder %s19_s19, %s490_s27  ;;  %p496_p5 = scmp.lt.s32.totalorder %s490_s27, %s490_s27 }
   0xa   :  { %p497_p6 = por %p496_p5, %p495_p4 }
   0xc   :  { %p498_p7 = pnand %p497_p6, %p491_p3 }
   0xe   :  { %501 = shalt.err (!%p498_p7)
}
   0xf   :  { %s505_s28 = smov 512   ;;  %s506_s29 = smov 32  }
  0x10   :  { %24 = dma.hbm_to_vmem [thread:$0]  %s640_s1, 2048, %s19_s19, [#allocation3], %s505_s28, %s505_s28, %s506_s29  }
  0x11   :  { %502 = dma.done.wait [#allocation3], 2048  }
  0x12   :  { %503 = vsyncadd [#allocation3], 4294965248  ;;  %v507_v0 = vmov 0.0   ;;  %v36_v1 = vld [vmem:[#allocation2 + $0x8] sm:$0xff]  ;;  %v38_v3 = vld [vmem:[#allocation2 + $0x18] sm:$0xff]  ;;  %vm73_vm0 = vcmask 261120   ;;  %v53_v26 = vlaneseq }
  0x13   :  { %141 = vmatprep.mubr.f32.mxu0 %v507_v0  ;;  %212 = vmatprep.mubr.f32.mxu1 %v507_v0  ;;  %v40_v2 = vld [vmem:[#allocation2 + $0x28] sm:$0xff]  ;;  %v42_v5 = vld [vmem:[#allocation2 + $0x38] sm:$0xff]  ;;  %v35_v6 = vld [vmem:[#allocation2] sm:$0xff]  ;;  %vm219_vm1 = vcmask 1041408  }
  0x14   :  { %v450_v4 = vpack.c.bf16 %v40_v2, %v36_v1  ;;  %v39_v7 = vld [vmem:[#allocation2 + $0x20] sm:$0xff]  ;;  %v458_v8 = vpack.c.bf16 %v42_v5, %v38_v3  ;;  %v37_v10 = vld [vmem:[#allocation2 + $0x10] sm:$0xff]  ;;  %v44_v12 = vld [vmem:[#allocation2 + $0x48] sm:$0xff]  ;;  %v555_v27 = vshrl.u32 %v53_v26, 7 }
  0x15   :  { %v452_v9 = vpack.c.bf16 %v39_v7, %v35_v6  ;;  %v41_v11 = vld [vmem:[#allocation2 + $0x30] sm:$0xff]  ;;  %v48_v14 = vld [vmem:[#allocation2 + $0x68] sm:$0xff]  ;;  %v46_v15 = vld [vmem:[#allocation2 + $0x58] sm:$0xff] }
  0x16   :  { %451 = vmatprep.subr.bf16.mxu0 %v450_v4  ;;  %v460_v13 = vpack.c.bf16 %v41_v11, %v37_v10  ;;  %v50_v16 = vld [vmem:[#allocation2 + $0x78] sm:$0xff]  ;;  %459 = vmatprep.subr.bf16.mxu1 %v458_v8  ;;  %v454_v17 = vpack.c.bf16 %v48_v14, %v44_v12  ;;  %v43_v19 = vld [vmem:[#allocation2 + $0x40] sm:$0xff]  ;;  %v45_v21 = vld [vmem:[#allocation2 + $0x50] sm:$0xff]  ;;  %v558_v28 = vsub.s32 0, %v555_v27  ;;  %v564_v30 = vsub.s32 2, %v555_v27 }
  0x17   :  { %453 = vmatpush1.bf16.msra.mxu0 %v452_v9  ;;  %v462_v18 = vpack.c.bf16 %v50_v16, %v46_v15  ;;  %v47_v20 = vld [vmem:[#allocation2 + $0x60] sm:$0xff]  ;;  %v49_v23 = vld [vmem:[#allocation2 + $0x70] sm:$0xff]  ;;  %v567_v31 = vsub.s32 1, %v555_v27  ;;  %v570_v32 = vsub.s32 3, %v555_v27 }
  0x18   :  { %461 = vmatpush1.bf16.msra.mxu1 %v460_v13  ;;  %v456_v22 = vpack.c.bf16 %v47_v20, %v43_v19  ;;  %455 = vmatprep.subr.bf16.mxu0 %v454_v17  ;;  %v464_v24 = vpack.c.bf16 %v49_v23, %v45_v21  ;;  %v34_v25 = vld [vmem:[%s639_s0] sm:$0x3] }
  0x19   :  { %463 = vmatprep.subr.bf16.mxu1 %v462_v18  ;;  %v51_v29 = vld [vmem:[%s641_s2] sm:$0xf] }
  0x1a   :  { %v56_v33 = vrot.slane %v51_v29, %v558_v28  ;;  %v64_v34 = vrot.slane %v51_v29, %v564_v30  ;;  %v60_v35 = vrot.slane %v51_v29, %v567_v31  ;;  %v68_v36 = vrot.slane %v51_v29, %v570_v32 }
  0x1b   :  { %457 = vmatpush1.bf16.msra.mxu0 %v456_v22 }
  0x1c   :  { %465 = vmatpush1.bf16.msra.mxu1 %v464_v24 }
  0x1e   :  { %448 = vmatmul.mubr.msk.f32.vlgmr.msra.gmra.mrb[0].mxu0 %vm73_vm0, %v34_v25 }
  0x1f   :  { %449 = vmatmul.mubr.msk.f32.vlgmr.msra.gmra.mrb[0].mxu1 %vm73_vm0, %v34_v25 }
  0xf1   :  { %v143_v37 = vpop.f32.mrb[0].mxu0 }
  0xf2   :  { %v576_v38 = vadd.f32 %v143_v37, %v56_v33  ;;  %v214_v39 = vpop.f32.mrb[0].mxu1  ;;  %v145_v40 = vpop.f32.mrb[1].mxu0 }
  0xf3   :  { %v578_v41 = vadd.f32 %v214_v39, %v64_v34  ;;  %v580_v42 = vadd.f32 %v145_v40, %v60_v35  ;;  %v216_v43 = vpop.f32.mrb[1].mxu1 }
  0xf4   :  { %v220_v44 = vsel %vm219_vm1, %v576_v38, 0.0  ;;  %v584_v45 = vadd.f32 %v216_v43, %v68_v36 }
  0xf5   :  { %v221_v46 = vrot.slane %v220_v44, 4  ;;  %v234_v47 = vsel %vm219_vm1, %v578_v41, 0.0  ;;  %v227_v48 = vsel %vm219_vm1, %v580_v42, 0.0 }
  0xf6   :  { %v235_v49 = vrot.slane %v234_v47, 4  ;;  %v228_v50 = vrot.slane %v227_v48, 4  ;;  %v241_v51 = vsel %vm219_vm1, %v584_v45, 0.0 }
  0xf7   :  { %v222_v52 = vadd.f32 %v221_v46, %v220_v44  ;;  %v242_v53 = vrot.slane %v241_v51, 4 }
  0xf8   :  { %v236_v54 = vadd.f32 %v235_v49, %v234_v47  ;;  %v229_v55 = vadd.f32 %v228_v50, %v227_v48 }
  0xf9   :  { %v223_v56 = vrot.slane %v222_v52, 2  ;;  %v243_v57 = vadd.f32 %v242_v53, %v241_v51 }
  0xfa   :  { %v237_v58 = vrot.slane %v236_v54, 2  ;;  %v230_v59 = vrot.slane %v229_v55, 2 }
  0xfb   :  { %v224_v60 = vadd.f32 %v223_v56, %v222_v52  ;;  %v244_v61 = vrot.slane %v243_v57, 2 }
  0xfc   :  { %v238_v62 = vadd.f32 %v237_v58, %v236_v54  ;;  %v231_v63 = vadd.f32 %v230_v59, %v229_v55 }
  0xfd   :  { %v225_v0 = vrot.slane %v224_v60, 1  ;;  %v245_v1 = vadd.f32 %v244_v61, %v243_v57 }
  0xfe   :  { %v239_v2 = vrot.slane %v238_v62, 1  ;;  %v232_v3 = vrot.slane %v231_v63, 1 }
  0xff   :  { %v226_v4 = vadd.f32 %v225_v0, %v224_v60  ;;  %v246_v5 = vrot.slane %v245_v1, 1 }
 0x100   :  { %v240_v6 = vadd.f32 %v239_v2, %v238_v62  ;;  %v233_v7 = vadd.f32 %v232_v3, %v231_v63  ;;  %v508_v2 = vmov 1966171168  }
 0x101   :  { %v592_v8 = vmul.f32 0.5, %v226_v4  ;;  %v247_v9 = vadd.f32 %v246_v5, %v245_v1  ;;  %v308_v3 = vunpack.c.l.s4 %v508_v2 }
 0x102   :  { %v594_v10 = vmul.f32 0.5, %v240_v6  ;;  %v596_v11 = vmul.f32 0.5, %v233_v7 }
 0x103   :  { %v252_v12 = vsub.f32 %v576_v38, %v592_v8  ;;  %v600_v13 = vmul.f32 0.5, %v247_v9  ;;  %v309_v4 = vunpack.c.0.s8 %v308_v3 }
 0x104   :  { %v254_v14 = vsub.f32 %v578_v41, %v594_v10  ;;  %v253_v15 = vsub.f32 %v580_v42, %v596_v11 }
 0x105   :  { %v256_v16 = vmul.f32 %v252_v12, %v252_v12  ;;  %v255_v17 = vsub.f32 %v584_v45, %v600_v13  ;;  %v312_v7 = vsub.s32 %v309_v4, %v555_v27 }
 0x106   :  { %v258_v18 = vmul.f32 %v254_v14, %v254_v14  ;;  %v257_v19 = vmul.f32 %v253_v15, %v253_v15 }
 0x107   :  { %v260_v20 = vsel %vm219_vm1, %v256_v16, 0.0  ;;  %v259_v21 = vmul.f32 %v255_v17, %v255_v17 }
 0x108   :  { %v261_v22 = vrot.slane %v260_v20, 4  ;;  %v274_v23 = vsel %vm219_vm1, %v258_v18, 0.0  ;;  %v267_v24 = vsel %vm219_vm1, %v257_v19, 0.0  ;;  %v292_v19 = vld [vmem:[%s642_s3] sm:$0xf] }
 0x109   :  { %v275_v25 = vrot.slane %v274_v23, 4  ;;  %v268_v26 = vrot.slane %v267_v24, 4  ;;  %v281_v29 = vsel %vm219_vm1, %v259_v21, 0.0 }
 0x10a   :  { %v262_v33 = vadd.f32 %v261_v22, %v260_v20  ;;  %v282_v34 = vrot.slane %v281_v29, 4 }
 0x10b   :  { %v276_v35 = vadd.f32 %v275_v25, %v274_v23  ;;  %v269_v36 = vadd.f32 %v268_v26, %v267_v24 }
 0x10c   :  { %v263_v37 = vrot.slane %v262_v33, 2  ;;  %v283_v39 = vadd.f32 %v282_v34, %v281_v29 }
 0x10d   :  { %v277_v40 = vrot.slane %v276_v35, 2  ;;  %v270_v43 = vrot.slane %v269_v36, 2 }
 0x10e   :  { %v264_v44 = vadd.f32 %v263_v37, %v262_v33  ;;  %v284_v46 = vrot.slane %v283_v39, 2 }
 0x10f   :  { %v278_v47 = vadd.f32 %v277_v40, %v276_v35  ;;  %v271_v48 = vadd.f32 %v270_v43, %v269_v36 }
 0x110   :  { %v265_v49 = vrot.slane %v264_v44, 1  ;;  %v285_v50 = vadd.f32 %v284_v46, %v283_v39 }
 0x111   :  { %v279_v51 = vrot.slane %v278_v47, 1  ;;  %v272_v52 = vrot.slane %v271_v48, 1 }
 0x112   :  { %v266_v53 = vadd.f32 %v265_v49, %v264_v44  ;;  %v286_v54 = vrot.slane %v285_v50, 1 }
 0x113   :  { %v280_v55 = vadd.f32 %v279_v51, %v278_v47  ;;  %v273_v56 = vadd.f32 %v272_v52, %v271_v48 }
 0x114   :  { %v288_v57 = vmul.f32 0.5, %v266_v53  ;;  %v287_v58 = vadd.f32 %v286_v54, %v285_v50 }
 0x115   :  { %v290_v59 = vmul.f32 0.5, %v280_v55  ;;  %v289_v60 = vmul.f32 0.5, %v273_v56 }
 0x116   :  { %v293_v61 = vadd.f32 1e-05, %v288_v57  ;;  %v291_v62 = vmul.f32 0.5, %v287_v58 }
 0x117   :  { %v295_v63 = vadd.f32 1e-05, %v290_v59  ;;  %v294_v0 = vadd.f32 1e-05, %v289_v60 }
 0x118   :  { %472 = vrsqrt.f32 %v293_v61  ;;  %v296_v1 = vadd.f32 1e-05, %v291_v62 }
 0x119   :  { %474 = vrsqrt.f32 %v295_v63 }
 0x11a   :  { %476 = vrsqrt.f32 %v294_v0 }
 0x11b   :  { %478 = vrsqrt.f32 %v296_v1 }
 0x122   :  { %v473_v5 = vpop.eup %472 }
 0x123   :  { %v475_v6 = vpop.eup %474 }
 0x124   :  { %v477_v9 = vpop.eup %476 }
 0x125   :  { %v479_v12 = vpop.eup %478  ;;  %v305_v14 = vcombine.low %v473_v5, %v477_v9 }
 0x126   :  { %v306_v15 = vcombine.low %v475_v6, %v479_v12 }
 0x127   :  { %v313_v16 = vrot.slane %v305_v14, %v312_v7 }
 0x128   :  { %v320_v17 = vrot.slane %v306_v15, %v312_v7 }
 0x12a   :  { %v321_v18 = vcombine.low %v313_v16, %v320_v17 }
 0x12c   :  { %v328_v20 = vrot.slane %v321_v18, %v312_v7 }
 0x12e   :  { %v330_v21 = vmul.f32 %v328_v20, %v292_v19 }
 0x130   :  { %v336_v22 = vrot.slane %v330_v21, %v558_v28  ;;  %v340_v23 = vrot.slane %v330_v21, %v567_v31  ;;  %v344_v24 = vrot.slane %v330_v21, %v564_v30  ;;  %v348_v25 = vrot.slane %v330_v21, %v570_v32 }
 0x132   :  { %v353_v26 = vmul.f32 %v336_v22, %v592_v8  ;;  %v354_v29 = vmul.f32 %v340_v23, %v596_v11  ;;  %v355_v33 = vmul.f32 %v344_v24, %v594_v10  ;;  %v356_v34 = vmul.f32 %v348_v25, %v600_v13  ;;  %v331_v8 = vld [vmem:[%s643_s4] sm:$0xf] }
 0x133   :  { %v387_v35 = vmul.f32 %v336_v22, %v576_v38  ;;  %v388_v36 = vmul.f32 %v340_v23, %v580_v42  ;;  %v389_v37 = vmul.f32 %v344_v24, %v578_v41  ;;  %v390_v39 = vmul.f32 %v348_v25, %v584_v45 }
 0x134   :  { %v361_v40 = vcombine.low %v353_v26, %v354_v29  ;;  %v362_v43 = vcombine.low %v355_v33, %v356_v34  ;;  %v509_v10 = vmov 1983009808  }
 0x135   :  { %v427_v11 = vunpack.c.l.s4 %v509_v10 }
 0x136   :  { %v369_v44 = vrot.slane %v361_v40, %v312_v7  ;;  %v376_v46 = vrot.slane %v362_v43, %v312_v7 }
 0x137   :  { %v428_v38 = vunpack.c.0.s8 %v427_v11 }
 0x138   :  { %v377_v47 = vcombine.low %v369_v44, %v376_v46 }
 0x139   :  { %v431_v54 = vsub.s32 %v428_v38, %v555_v27 }
 0x13a   :  { %v384_v13 = vrot.slane %v377_v47, %v312_v7 }
 0x13c   :  { %v386_v48 = vsub.f32 %v331_v8, %v384_v13 }
 0x13e   :  { %v395_v42 = vrot.slane %v386_v48, %v558_v28  ;;  %v399_v41 = vrot.slane %v386_v48, %v567_v31  ;;  %v403_v45 = vrot.slane %v386_v48, %v564_v30  ;;  %v407_v49 = vrot.slane %v386_v48, %v570_v32 }
 0x140   :  { %v412_v50 = vadd.f32 %v395_v42, %v387_v35  ;;  %v413_v51 = vadd.f32 %v399_v41, %v388_v36  ;;  %v414_v52 = vadd.f32 %v403_v45, %v389_v37  ;;  %v415_v53 = vadd.f32 %v407_v49, %v390_v39 }
 0x142   :  { %v416_v55 = vmax.f32 %v412_v50, 0.0  ;;  %v417_v56 = vmax.f32 %v413_v51, 0.0  ;;  %v418_v57 = vmax.f32 %v414_v52, 0.0  ;;  %v419_v58 = vmax.f32 %v415_v53, 0.0 }
 0x144   :  { %v424_v59 = vcombine.low %v416_v55, %v417_v56  ;;  %v425_v60 = vcombine.low %v418_v57, %v419_v58 }
 0x146   :  { %v432_v61 = vrot.slane %v424_v59, %v431_v54  ;;  %v439_v28 = vrot.slane %v425_v60, %v431_v54 }
 0x148   :  { %v440_v62 = vcombine.low %v432_v61, %v439_v28 }
 0x14a   :  { %442 = vst [vmem:[%s644_s5] sm:$0xff] %v440_v62 }
 0x14b   :  { %447 = vsyncpa [#allocation3], 1 }

// kernel: generator_forward.5
= control target key start
LH: loop header
LB: loop body
LE: loop exit
PB: predicated region body
PF: predicated region fallthrough
CT: control target
= control target key end

     0   :  { %v971_v3 = vmov 0   ;;  %vm410_vm0 = vcmask 261120   ;;  %s1338_s0 = inlined_call_operand.vmem [shape: f32[4,128,32], index: 0, kind: input, shape index: {}]   ;;  %s1339_s1 = inlined_call_operand.vmem [shape: f32[4,16,128], index: 1, kind: input, shape index: {}]   ;;  %s1340_s2 = inlined_call_operand.vmem [shape: f32[16,1], index: 2, kind: input, shape index: {}]   ;;  %s1341_s3 = inlined_call_operand.vmem [shape: f32[16,1], index: 3, kind: input, shape index: {}]   ;;  %s1342_s4 = inlined_call_operand.vmem [shape: f32[16,1], index: 4, kind: input, shape index: {}]   ;;  %s1343_s5 = inlined_call_operand.vmem [shape: f32[4,16,32], index: 5, kind: output, shape index: {}]  }
   0x1   :  { %v22_v0 = vld [vmem:[%s1338_s0] sm:$0xff]  ;;  %v23_v1 = vld [vmem:[%s1338_s0 + $0x8] sm:$0xff]  ;;  %965 = vset.pattern.permute.xlu0 %v971_v3  ;;  %966 = vset.pattern.permute.xlu1 %v971_v3  ;;  %v24_v6 = vld [vmem:[%s1338_s0 + $0x10] sm:$0xff] }
   0x2   :  { %v566_v2 = vld [vmem:[%s1338_s0 + $0x80] sm:$0xff]  ;;  %v836_v4 = vpack.c.bf16 %v23_v1, %v22_v0  ;;  %v567_v5 = vld [vmem:[%s1338_s0 + $0x88] sm:$0xff]  ;;  %v25_v7 = vld [vmem:[%s1338_s0 + $0x18] sm:$0xff] }
   0x3   :  { %v868_v8 = vpack.c.bf16 %v567_v5, %v566_v2  ;;  %v840_v9 = vpack.c.bf16 %v25_v7, %v24_v6  ;;  %v568_v10 = vld [vmem:[%s1338_s0 + $0x90] sm:$0xff]  ;;  %v569_v11 = vld [vmem:[%s1338_s0 + $0x98] sm:$0xff]  ;;  %v26_v12 = vld [vmem:[%s1338_s0 + $0x20] sm:$0xff] }
   0x4   :  { %837 = vmatprep.subr.bf16.mxu0 %v836_v4  ;;  %v872_v13 = vpack.c.bf16 %v569_v11, %v568_v10  ;;  %v27_v14 = vld [vmem:[%s1338_s0 + $0x28] sm:$0xff]  ;;  %v570_v15 = vld [vmem:[%s1338_s0 + $0xa0] sm:$0xff]  ;;  %v28_v19 = vld [vmem:[%s1338_s0 + $0x30] sm:$0xff] }
   0x5   :  { %v571_v16 = vld [vmem:[%s1338_s0 + $0xa8] sm:$0xff]  ;;  %869 = vmatprep.subr.bf16.mxu1 %v868_v8  ;;  %839 = vmatpush3.bf16.msra.mxu0 %v836_v4  ;;  %v844_v17 = vpack.c.bf16 %v27_v14, %v26_v12  ;;  %v29_v20 = vld [vmem:[%s1338_s0 + $0x38] sm:$0xff]  ;;  %v572_v21 = vld [vmem:[%s1338_s0 + $0xb0] sm:$0xff] }
   0x6   :  { %871 = vmatpush3.bf16.msra.mxu1 %v868_v8  ;;  %841 = vmatprep.subr.bf16.mxu0 %v840_v9  ;;  %v876_v18 = vpack.c.bf16 %v571_v16, %v570_v15  ;;  %v573_v22 = vld [vmem:[%s1338_s0 + $0xb8] sm:$0xff]  ;;  %v848_v23 = vpack.c.bf16 %v29_v20, %v28_v19  ;;  %v30_v25 = vld [vmem:[%s1338_s0 + $0x40] sm:$0xff]  ;;  %v31_v26 = vld [vmem:[%s1338_s0 + $0x48] sm:$0xff] }
   0x7   :  { %873 = vmatprep.subr.bf16.mxu1 %v872_v13  ;;  %v880_v24 = vpack.c.bf16 %v573_v22, %v572_v21  ;;  %v20_v27 = vld [vmem:[%s1339_s1] sm:$0xff]  ;;  %v575_v29 = vld [vmem:[%s1338_s0 + $0xc8] sm:$0xff]  ;;  %v564_v30 = vld [vmem:[%s1339_s1 + $0x10] sm:$0xff]  ;;  %v852_v31 = vpack.c.bf16 %v31_v26, %v30_v25 }
   0x8   :  { %v574_v28 = vld [vmem:[%s1338_s0 + $0xc0] sm:$0xff]  ;;  %728 = vmatprep.mubr.f32.mxu0 %v20_v27  ;;  %763 = vmatprep.mubr.f32.mxu1 %v564_v30  ;;  %v32_v33 = vld [vmem:[%s1338_s0 + $0x50] sm:$0xff]  ;;  %v33_v34 = vld [vmem:[%s1338_s0 + $0x58] sm:$0xff] }
   0x9   :  { %843 = vmatpush3.bf16.msra.mxu0 %v840_v9  ;;  %v884_v32 = vpack.c.bf16 %v575_v29, %v574_v28  ;;  %v576_v35 = vld [vmem:[%s1338_s0 + $0xd0] sm:$0xff]  ;;  %v577_v36 = vld [vmem:[%s1338_s0 + $0xd8] sm:$0xff]  ;;  %v856_v37 = vpack.c.bf16 %v33_v34, %v32_v33  ;;  %v34_v39 = vld [vmem:[%s1338_s0 + $0x60] sm:$0xff] }
   0xa   :  { %875 = vmatpush3.bf16.msra.mxu1 %v872_v13  ;;  %845 = vmatprep.subr.bf16.mxu0 %v844_v17  ;;  %v888_v38 = vpack.c.bf16 %v577_v36, %v576_v35  ;;  %v35_v40 = vld [vmem:[%s1338_s0 + $0x68] sm:$0xff]  ;;  %v578_v41 = vld [vmem:[%s1338_s0 + $0xe0] sm:$0xff]  ;;  %v36_v45 = vld [vmem:[%s1338_s0 + $0x70] sm:$0xff] }
   0xb   :  { %877 = vmatprep.subr.bf16.mxu1 %v876_v18  ;;  %v579_v42 = vld [vmem:[%s1338_s0 + $0xe8] sm:$0xff]  ;;  %v860_v43 = vpack.c.bf16 %v35_v40, %v34_v39  ;;  %v37_v46 = vld [vmem:[%s1338_s0 + $0x78] sm:$0xff]  ;;  %v580_v47 = vld [vmem:[%s1338_s0 + $0xf0] sm:$0xff] }
   0xc   :  { %v892_v44 = vpack.c.bf16 %v579_v42, %v578_v41  ;;  %v581_v48 = vld [vmem:[%s1338_s0 + $0xf8] sm:$0xff]  ;;  %v38_v49 = vld [vmem:[%s1340_s2] sm:$0xff]  ;;  %v864_v50 = vpack.c.bf16 %v37_v46, %v36_v45  ;;  %v585_v53 = vld [vmem:[%s1338_s0 + $0x108] sm:$0xff] }
   0xd   :  { %847 = vmatpush3.bf16.msra.mxu0 %v844_v17  ;;  %v896_v51 = vpack.c.bf16 %v581_v48, %v580_v47  ;;  %v584_v52 = vld [vmem:[%s1338_s0 + $0x100] sm:$0xff]  ;;  %42 = vperm.xlu0 %965, %v38_v49   ;;  %v603_v55 = vld [vmem:[%s1338_s0 + $0x188] sm:$0xff]  ;;  %v586_v59 = vld [vmem:[%s1338_s0 + $0x110] sm:$0xff] }
   0xe   :  { %879 = vmatpush3.bf16.msra.mxu1 %v876_v18  ;;  %849 = vmatprep.subr.bf16.mxu0 %v848_v23  ;;  %v602_v54 = vld [vmem:[%s1338_s0 + $0x180] sm:$0xff]  ;;  %v39_v56 = vld [vmem:[%s1340_s2 + $0x8] sm:$0xff]  ;;  %v900_v57 = vpack.c.bf16 %v585_v53, %v584_v52  ;;  %v587_v60 = vld [vmem:[%s1338_s0 + $0x118] sm:$0xff] }
   0xf   :  { %881 = vmatprep.subr.bf16.mxu1 %v880_v24  ;;  %v932_v58 = vpack.c.bf16 %v603_v55, %v602_v54  ;;  %v604_v61 = vld [vmem:[%s1338_s0 + $0x190] sm:$0xff]  ;;  %v605_v62 = vld [vmem:[%s1338_s0 + $0x198] sm:$0xff]  ;;  %v21_v63 = vld [vmem:[%s1339_s1 + $0x8] sm:$0xff]  ;;  %v904_v1 = vpack.c.bf16 %v587_v60, %v586_v59 }
  0x10   :  { %v565_v0 = vld [vmem:[%s1339_s1 + $0x18] sm:$0xff]  ;;  %v936_v2 = vpack.c.bf16 %v605_v62, %v604_v61  ;;  %v588_v3 = vld [vmem:[%s1338_s0 + $0x120] sm:$0xff]  ;;  %v589_v4 = vld [vmem:[%s1338_s0 + $0x128] sm:$0xff] }
  0x11   :  { %851 = vmatpush3.bf16.msra.mxu0 %v848_v23  ;;  %47 = vperm.xlu0 %965, %v39_v56   ;;  %v606_v5 = vld [vmem:[%s1338_s0 + $0x1a0] sm:$0xff]  ;;  %v607_v6 = vld [vmem:[%s1338_s0 + $0x1a8] sm:$0xff]  ;;  %v600_v8 = vld [vmem:[%s1339_s1 + $0x30] sm:$0xff]  ;;  %v908_v9 = vpack.c.bf16 %v589_v4, %v588_v3 }
  0x12   :  { %883 = vmatpush3.bf16.msra.mxu1 %v880_v24  ;;  %853 = vmatprep.subr.bf16.mxu0 %v852_v31  ;;  %v582_v7 = vld [vmem:[%s1339_s1 + $0x20] sm:$0xff]  ;;  %v940_v10 = vpack.c.bf16 %v607_v6, %v606_v5  ;;  %v590_v11 = vld [vmem:[%s1338_s0 + $0x130] sm:$0xff]  ;;  %v591_v12 = vld [vmem:[%s1338_s0 + $0x138] sm:$0xff] }
  0x13   :  { %885 = vmatprep.subr.bf16.mxu1 %v884_v32  ;;  %v608_v13 = vld [vmem:[%s1338_s0 + $0x1b0] sm:$0xff]  ;;  %v609_v14 = vld [vmem:[%s1338_s0 + $0x1b8] sm:$0xff]  ;;  %v912_v15 = vpack.c.bf16 %v591_v12, %v590_v11  ;;  %v592_v17 = vld [vmem:[%s1338_s0 + $0x140] sm:$0xff] }
  0x14   :  { %v944_v16 = vpack.c.bf16 %v609_v14, %v608_v13  ;;  %v593_v18 = vld [vmem:[%s1338_s0 + $0x148] sm:$0xff]  ;;  %v610_v19 = vld [vmem:[%s1338_s0 + $0x1c0] sm:$0xff]  ;;  %v594_v23 = vld [vmem:[%s1338_s0 + $0x150] sm:$0xff] }
  0x15   :  { %855 = vmatpush3.bf16.msra.mxu0 %v852_v31  ;;  %v611_v20 = vld [vmem:[%s1338_s0 + $0x1c8] sm:$0xff]  ;;  %v916_v21 = vpack.c.bf16 %v593_v18, %v592_v17  ;;  %v595_v24 = vld [vmem:[%s1338_s0 + $0x158] sm:$0xff]  ;;  %v612_v25 = vld [vmem:[%s1338_s0 + $0x1d0] sm:$0xff] }
  0x16   :  { %887 = vmatpush3.bf16.msra.mxu1 %v884_v32  ;;  %857 = vmatprep.subr.bf16.mxu0 %v856_v37  ;;  %v948_v22 = vpack.c.bf16 %v611_v20, %v610_v19  ;;  %v613_v26 = vld [vmem:[%s1338_s0 + $0x1d8] sm:$0xff]  ;;  %v920_v27 = vpack.c.bf16 %v595_v24, %v594_v23  ;;  %v596_v29 = vld [vmem:[%s1338_s0 + $0x160] sm:$0xff]  ;;  %v597_v30 = vld [vmem:[%s1338_s0 + $0x168] sm:$0xff] }
  0x17   :  { %889 = vmatprep.subr.bf16.mxu1 %v888_v38  ;;  %v952_v28 = vpack.c.bf16 %v613_v26, %v612_v25  ;;  %v614_v31 = vld [vmem:[%s1338_s0 + $0x1e0] sm:$0xff]  ;;  %v615_v32 = vld [vmem:[%s1338_s0 + $0x1e8] sm:$0xff]  ;;  %v924_v33 = vpack.c.bf16 %v597_v30, %v596_v29  ;;  %v598_v35 = vld [vmem:[%s1338_s0 + $0x170] sm:$0xff] }
  0x18   :  { %v956_v34 = vpack.c.bf16 %v615_v32, %v614_v31  ;;  %v599_v36 = vld [vmem:[%s1338_s0 + $0x178] sm:$0xff]  ;;  %v583_v41 = vld [vmem:[%s1339_s1 + $0x28] sm:$0xff] }
  0x19   :  { %859 = vmatpush3.bf16.msra.mxu0 %v856_v37  ;;  %v616_v37 = vld [vmem:[%s1338_s0 + $0x1f0] sm:$0xff]  ;;  %v928_v39 = vpack.c.bf16 %v599_v36, %v598_v35  ;;  %v601_v42 = vld [vmem:[%s1339_s1 + $0x38] sm:$0xff] }
  0x1a   :  { %891 = vmatpush3.bf16.msra.mxu1 %v888_v38  ;;  %861 = vmatprep.subr.bf16.mxu0 %v860_v43  ;;  %v617_v38 = vld [vmem:[%s1338_s0 + $0x1f8] sm:$0xff] }
  0x1b   :  { %893 = vmatprep.subr.bf16.mxu1 %v892_v44  ;;  %v960_v40 = vpack.c.bf16 %v617_v38, %v616_v37 }
  0x1d   :  { %863 = vmatpush3.bf16.msra.mxu0 %v860_v43 }
  0x1e   :  { %895 = vmatpush3.bf16.msra.mxu1 %v892_v44  ;;  %865 = vmatprep.subr.bf16.mxu0 %v864_v50 }
  0x1f   :  { %897 = vmatprep.subr.bf16.mxu1 %v896_v51 }
  0x21   :  { %867 = vmatpush3.bf16.msra.mxu0 %v864_v50 }
  0x22   :  { %899 = vmatpush3.bf16.msra.mxu1 %v896_v51  ;;  %901 = vmatprep.subr.bf16.mxu0 %v900_v57 }
  0x23   :  { %933 = vmatprep.subr.bf16.mxu1 %v932_v58 }
  0x24   :  { %729 = vmatmul.mubr.f32.vlgmr.msra.gmra.mrb[0].mxu0 %v21_v63 }
  0x25   :  { %764 = vmatmul.mubr.f32.vlgmr.msra.gmra.mrb[0].mxu1 %v565_v0  ;;  %903 = vmatpush3.bf16.msra.mxu0 %v900_v57 }
  0x26   :  { %935 = vmatpush3.bf16.msra.mxu1 %v932_v58  ;;  %905 = vmatprep.subr.bf16.mxu0 %v904_v1 }
  0x27   :  { %937 = vmatprep.subr.bf16.mxu1 %v936_v2  ;;  %798 = vmatprep.mubr.f32.mxu0 %v582_v7 }
  0x28   :  { %833 = vmatprep.mubr.f32.mxu1 %v600_v8 }
  0x29   :  { %907 = vmatpush3.bf16.msra.mxu0 %v904_v1 }
  0x2a   :  { %939 = vmatpush3.bf16.msra.mxu1 %v936_v2  ;;  %909 = vmatprep.subr.bf16.mxu0 %v908_v9 }
  0x2b   :  { %941 = vmatprep.subr.bf16.mxu1 %v940_v10 }
  0x2d   :  { %911 = vmatpush3.bf16.msra.mxu0 %v908_v9 }
  0x2e   :  { %943 = vmatpush3.bf16.msra.mxu1 %v940_v10  ;;  %913 = vmatprep.subr.bf16.mxu0 %v912_v15 }
  0x2f   :  { %945 = vmatprep.subr.bf16.mxu1 %v944_v16 }
  0x31   :  { %915 = vmatpush3.bf16.msra.mxu0 %v912_v15 }
  0x32   :  { %947 = vmatpush3.bf16.msra.mxu1 %v944_v16  ;;  %917 = vmatprep.subr.bf16.mxu0 %v916_v21 }
  0x33   :  { %949 = vmatprep.subr.bf16.mxu1 %v948_v22 }
  0x35   :  { %919 = vmatpush3.bf16.msra.mxu0 %v916_v21 }
  0x36   :  { %951 = vmatpush3.bf16.msra.mxu1 %v948_v22  ;;  %921 = vmatprep.subr.bf16.mxu0 %v920_v27 }
  0x37   :  { %953 = vmatprep.subr.bf16.mxu1 %v952_v28 }
  0x39   :  { %923 = vmatpush3.bf16.msra.mxu0 %v920_v27 }
  0x3a   :  { %955 = vmatpush3.bf16.msra.mxu1 %v952_v28  ;;  %925 = vmatprep.subr.bf16.mxu0 %v924_v33 }
  0x3b   :  { %957 = vmatprep.subr.bf16.mxu1 %v956_v34 }
  0x3d   :  { %927 = vmatpush3.bf16.msra.mxu0 %v924_v33 }
  0x3e   :  { %959 = vmatpush3.bf16.msra.mxu1 %v956_v34  ;;  %929 = vmatprep.subr.bf16.mxu0 %v928_v39 }
  0x3f   :  { %961 = vmatprep.subr.bf16.mxu1 %v960_v40 }
  0x41   :  { %931 = vmatpush3.bf16.msra.mxu0 %v928_v39 }
  0x42   :  { %963 = vmatpush3.bf16.msra.mxu1 %v960_v40 }
  0x44   :  { %799 = vmatmul.mubr.f32.vlgmr.msra.gmra.mrb[2].mxu0 %v583_v41 }
  0x45   :  { %834 = vmatmul.mubr.f32.vlgmr.msra.gmra.mrb[2].mxu1 %v601_v42 }
  0x8c   :  { %v43_v43 = vpop.permute.xlu0 %42 }
  0x90   :  { %v48_v44 = vpop.permute.xlu0 %47 }
  0xf7   :  { %v730_v45 = vpop.f32.mrb[0].mxu0 }
  0xf8   :  { %v1224_v46 = vadd.f32 %v730_v45, %v48_v44  ;;  %v116_v47 = vpop.f32.mrb[1].mxu0  ;;  %v765_v48 = vpop.f32.mrb[0].mxu1 }
  0xf9   :  { %v211_v49 = vpop.f32.mrb[1].mxu1  ;;  %v1226_v50 = vadd.f32 %v116_v47, %v43_v43  ;;  %v1232_v53 = vadd.f32 %v765_v48, %v48_v44 }
  0xfa   :  { %v1228_v51 = vadd.f32 %v211_v49, %v43_v43  ;;  %v414_v52 = vsel %vm410_vm0, %v1224_v46, 0.0 }
  0xfb   :  { %415 = vadd.xlane.f32.xlu1 %v414_v52  ;;  %v411_v55 = vsel %vm410_vm0, %v1226_v50, 0.0  ;;  %v420_v56 = vsel %vm410_vm0, %v1232_v53, 0.0 }
  0xfc   :  { %v417_v54 = vsel %vm410_vm0, %v1228_v51, 0.0 }
  0xfd   :  { %418 = vadd.xlane.f32.xlu0 %v417_v54 }
  0xff   :  { %412 = vadd.xlane.f32.xlu1 %v411_v55 }
 0x103   :  { %421 = vadd.xlane.f32.xlu1 %v420_v56 }
 0x117   :  { %v800_v57 = vpop.f32.mrb[2].mxu0 }
 0x118   :  { %v1240_v58 = vadd.f32 %v800_v57, %v48_v44  ;;  %v835_v59 = vpop.f32.mrb[2].mxu1  ;;  %v306_v60 = vpop.f32.mrb[3].mxu0 }
 0x119   :  { %v401_v61 = vpop.f32.mrb[3].mxu1  ;;  %v1242_v62 = vadd.f32 %v306_v60, %v43_v43  ;;  %v1250_v2 = vadd.f32 %v835_v59, %v48_v44 }
 0x11a   :  { %v428_v63 = vsel %vm410_vm0, %v1240_v58, 0.0  ;;  %v1246_v0 = vadd.f32 %v401_v61, %v43_v43 }
 0x11b   :  { %429 = vadd.xlane.f32.xlu1 %v428_v63  ;;  %v425_v1 = vsel %vm410_vm0, %v1242_v62, 0.0  ;;  %v436_v4 = vsel %vm410_vm0, %v1250_v2, 0.0 }
 0x11c   :  { %v433_v3 = vsel %vm410_vm0, %v1246_v0, 0.0 }
 0x11f   :  { %426 = vadd.xlane.f32.xlu1 %v425_v1 }
 0x123   :  { %434 = vadd.xlane.f32.xlu1 %v433_v3 }
 0x127   :  { %437 = vadd.xlane.f32.xlu1 %v436_v4 }
 0x188   :  { %v416_v5 = vpop.xlane.xlu1 %415 }
 0x18a   :  { %v419_v9 = vpop.xlane.xlu0 %418 }
 0x18c   :  { %v413_v6 = vpop.xlane.xlu1 %412 }
 0x18d   :  { %v423_v11 = vadd.f32 %v419_v9, %v413_v6 }
 0x190   :  { %v422_v7 = vpop.xlane.xlu1 %421 }
 0x191   :  { %v424_v14 = vadd.f32 %v422_v7, %v416_v5  ;;  %v492_v7 = vld [vmem:[%s1341_s3 + $0x8] sm:$0xff] }
 0x1a8   :  { %v430_v8 = vpop.xlane.xlu1 %429 }
 0x1a9   :  { %v432_v16 = vadd.f32 %v430_v8, %v424_v14 }
 0x1ac   :  { %v427_v10 = vpop.xlane.xlu1 %426 }
 0x1ad   :  { %v431_v12 = vadd.f32 %v427_v10, %v423_v11  ;;  %v491_v10 = vld [vmem:[%s1341_s3] sm:$0xff] }
 0x1b0   :  { %v435_v13 = vpop.xlane.xlu1 %434 }
 0x1b1   :  { %v439_v15 = vadd.f32 %v435_v13, %v431_v12  ;;  %v499_v13 = vld [vmem:[%s1342_s4] sm:$0xff] }
 0x1b3   :  { %v1256_v17 = vmul.f32 0.0078125, %v439_v15 }
 0x1b4   :  { %v438_v18 = vpop.xlane.xlu1 %437 }
 0x1b5   :  { %v440_v19 = vadd.f32 %v438_v18, %v432_v16  ;;  %v443_v21 = vsub.f32 %v1226_v50, %v1256_v17  ;;  %v453_v28 = vsub.f32 %v1228_v51, %v1256_v17  ;;  %v465_v33 = vsub.f32 %v1242_v62, %v1256_v17  ;;  %v500_v18 = vld [vmem:[%s1342_s4 + $0x8] sm:$0xff] }
 0x1b6   :  { %v477_v41 = vsub.f32 %v1246_v0, %v1256_v17 }
 0x1b7   :  { %v1258_v20 = vmul.f32 0.0078125, %v440_v19  ;;  %v445_v27 = vmul.f32 %v443_v21, %v443_v21  ;;  %v455_v37 = vmul.f32 %v453_v28, %v453_v28  ;;  %v467_v40 = vmul.f32 %v465_v33, %v465_v33 }
 0x1b8   :  { %v479_v43 = vmul.f32 %v477_v41, %v477_v41 }
 0x1b9   :  { %v454_v22 = vsub.f32 %v1232_v53, %v1258_v20  ;;  %v444_v23 = vsub.f32 %v1224_v46, %v1258_v20  ;;  %v466_v24 = vsub.f32 %v1240_v58, %v1258_v20  ;;  %v478_v32 = vsub.f32 %v1250_v2, %v1258_v20 }
 0x1ba   :  { %v447_v35 = vsel %vm410_vm0, %v445_v27, 0.0  ;;  %v457_v39 = vsel %vm410_vm0, %v455_v37, 0.0  ;;  %v469_v42 = vsel %vm410_vm0, %v467_v40, 0.0  ;;  %v481_v44 = vsel %vm410_vm0, %v479_v43, 0.0 }
 0x1bb   :  { %v456_v25 = vmul.f32 %v454_v22, %v454_v22  ;;  %v446_v26 = vmul.f32 %v444_v23, %v444_v23  ;;  %v468_v31 = vmul.f32 %v466_v24, %v466_v24  ;;  %v480_v36 = vmul.f32 %v478_v32, %v478_v32 }
 0x1bd   :  { %v460_v29 = vsel %vm410_vm0, %v456_v25, 0.0  ;;  %v450_v30 = vsel %vm410_vm0, %v446_v26, 0.0  ;;  %v472_v34 = vsel %vm410_vm0, %v468_v31, 0.0  ;;  %v484_v38 = vsel %vm410_vm0, %v480_v36, 0.0 }
 0x1be   :  { %461 = vadd.xlane.f32.xlu0 %v460_v29  ;;  %451 = vadd.xlane.f32.xlu1 %v450_v30 }
 0x1c2   :  { %473 = vadd.xlane.f32.xlu0 %v472_v34  ;;  %448 = vadd.xlane.f32.xlu1 %v447_v35 }
 0x1c6   :  { %485 = vadd.xlane.f32.xlu0 %v484_v38  ;;  %458 = vadd.xlane.f32.xlu1 %v457_v39 }
 0x1ca   :  { %470 = vadd.xlane.f32.xlu1 %v469_v42 }
 0x1ce   :  { %482 = vadd.xlane.f32.xlu1 %v481_v44 }
 0x24b   :  { %v462_v45 = vpop.xlane.xlu0 %461  ;;  %v452_v47 = vpop.xlane.xlu1 %451 }
 0x24c   :  { %v464_v52 = vadd.f32 %v462_v45, %v452_v47 }
 0x24f   :  { %v474_v48 = vpop.xlane.xlu0 %473  ;;  %v449_v49 = vpop.xlane.xlu1 %448 }
 0x250   :  { %v476_v54 = vadd.f32 %v474_v48, %v464_v52 }
 0x253   :  { %v486_v55 = vpop.xlane.xlu0 %485  ;;  %v459_v56 = vpop.xlane.xlu1 %458 }
 0x254   :  { %v488_v57 = vadd.f32 %v486_v55, %v476_v54  ;;  %v463_v63 = vadd.f32 %v459_v56, %v449_v49 }
 0x256   :  { %v490_v59 = vmul.f32 0.0078125, %v488_v57 }
 0x257   :  { %v471_v60 = vpop.xlane.xlu1 %470 }
 0x258   :  { %v494_v61 = vadd.f32 1e-05, %v490_v59  ;;  %v475_v1 = vadd.f32 %v471_v60, %v463_v63 }
 0x25a   :  { %967 = vrsqrt.f32 %v494_v61 }
 0x25b   :  { %v483_v3 = vpop.xlane.xlu1 %482 }
 0x25c   :  { %v487_v4 = vadd.f32 %v483_v3, %v475_v1 }
 0x25e   :  { %v489_v5 = vmul.f32 0.0078125, %v487_v4 }
 0x260   :  { %v493_v6 = vadd.f32 1e-05, %v489_v5 }
 0x262   :  { %969 = vrsqrt.f32 %v493_v6 }
 0x264   :  { %v968_v8 = vpop.eup %967 }
 0x265   :  { %v498_v9 = vmul.f32 %v968_v8, %v492_v7 }
 0x267   :  { %512 = vperm.xlu0 %965, %v498_v9   ;;  %v502_v16 = vmul.f32 %v498_v9, %v1258_v20 }
 0x269   :  { %v504_v19 = vsub.f32 %v500_v18, %v502_v16 }
 0x26c   :  { %v970_v11 = vpop.eup %969 }
 0x26d   :  { %v497_v12 = vmul.f32 %v970_v11, %v491_v10 }
 0x26f   :  { %507 = vperm.xlu1 %966, %v497_v12   ;;  %v501_v14 = vmul.f32 %v497_v12, %v1256_v17 }
 0x271   :  { %v503_v15 = vsub.f32 %v499_v13, %v501_v14 }
 0x273   :  { %519 = vperm.xlu1 %966, %v503_v15  }
 0x277   :  { %524 = vperm.xlu1 %966, %v504_v19  }
 0x2e6   :  { %v513_v22 = vpop.permute.xlu0 %512 }
 0x2e7   :  { %v516_v30 = vmul.f32 %v513_v22, %v1224_v46  ;;  %v530_v31 = vmul.f32 %v513_v22, %v1232_v53  ;;  %v534_v32 = vmul.f32 %v513_v22, %v1240_v58  ;;  %v538_v33 = vmul.f32 %v513_v22, %v1250_v2 }
 0x2ee   :  { %v508_v21 = vpop.permute.xlu1 %507 }
 0x2ef   :  { %v515_v23 = vmul.f32 %v508_v21, %v1226_v50  ;;  %v529_v24 = vmul.f32 %v508_v21, %v1228_v51  ;;  %v533_v25 = vmul.f32 %v508_v21, %v1242_v62  ;;  %v537_v17 = vmul.f32 %v508_v21, %v1246_v0 }
 0x2f2   :  { %v520_v26 = vpop.permute.xlu1 %519 }
 0x2f3   :  { %v527_v27 = vadd.f32 %v520_v26, %v515_v23  ;;  %v531_v20 = vadd.f32 %v529_v24, %v520_v26  ;;  %v535_v28 = vadd.f32 %v533_v25, %v520_v26  ;;  %v539_v29 = vadd.f32 %v537_v17, %v520_v26 }
 0x2f5   :  { %v541_v50 = vmax.f32 %v527_v27, 0.0  ;;  %v543_v34 = vmax.f32 %v531_v20, 0.0  ;;  %v545_v51 = vmax.f32 %v535_v28, 0.0  ;;  %v547_v35 = vmax.f32 %v539_v29, 0.0 }
 0x2f6   :  { %v525_v62 = vpop.permute.xlu1 %524 }
 0x2f7   :  { %549 = vst.msk [vmem:[%s1343_s5] sm:$0xff] %vm410_vm0, %v541_v50  ;;  %618 = vst.msk [vmem:[%s1343_s5 + $0x10] sm:$0xff] %vm410_vm0, %v543_v34  ;;  %v528_v46 = vadd.f32 %v525_v62, %v516_v30  ;;  %v532_v53 = vadd.f32 %v530_v31, %v525_v62  ;;  %v536_v58 = vadd.f32 %v534_v32, %v525_v62 }
 0x2f8   :  { %620 = vst.msk [vmem:[%s1343_s5 + $0x20] sm:$0xff] %vm410_vm0, %v545_v51  ;;  %622 = vst.msk [vmem:[%s1343_s5 + $0x30] sm:$0xff] %vm410_vm0, %v547_v35  ;;  %v540_v0 = vadd.f32 %v538_v33, %v525_v62 }
 0x2f9   :  { %v542_v2 = vmax.f32 %v528_v46, 0.0  ;;  %v544_v36 = vmax.f32 %v532_v53, 0.0  ;;  %v546_v37 = vmax.f32 %v536_v58, 0.0 }
 0x2fa   :  { %v548_v38 = vmax.f32 %v540_v0, 0.0 }
 0x2fb   :  { %550 = vst.msk [vmem:[%s1343_s5 + $0x8] sm:$0xff] %vm410_vm0, %v542_v2  ;;  %619 = vst.msk [vmem:[%s1343_s5 + $0x18] sm:$0xff] %vm410_vm0, %v544_v36 }
 0x2fc   :  { %621 = vst.msk [vmem:[%s1343_s5 + $0x28] sm:$0xff] %vm410_vm0, %v546_v37  ;;  %623 = vst.msk [vmem:[%s1343_s5 + $0x38] sm:$0xff] %vm410_vm0, %v548_v38 }

// kernel: generator_forward.6
= control target key start
LH: loop header
LB: loop body
LE: loop exit
PB: predicated region body
PF: predicated region fallthrough
CT: control target
= control target key end

     0   :  { %v635_v0 = vmov 0.0|0.0   ;;  %vm636_vm0 = vmmov 0   ;;  %v637_v8 = vmov 0.0   ;;  %v638_v12 = vmov 0   ;;  %s826_s0 = inlined_call_operand.vmem [shape: f32[4,64,128], index: 0, kind: input, shape index: {}]   ;;  %s827_s2 = inlined_call_operand.vmem [shape: f32[8,1], index: 2, kind: input, shape index: {}]   ;;  %s828_s1 = inlined_call_operand.vmem [shape: f32[4,8,64], index: 1, kind: input, shape index: {}]   ;;  %s829_s3 = inlined_call_operand.vmem [shape: f32[8,1], index: 3, kind: input, shape index: {}]   ;;  %s830_s4 = inlined_call_operand.vmem [shape: f32[8,1], index: 4, kind: input, shape index: {}]   ;;  %s831_s5 = inlined_call_operand.vmem [shape: f32[4,8,128], index: 5, kind: output, shape index: {}]  }
   0x1   :  { %579 = vmatprep.subr.bf16.mxu0 %v635_v0  ;;  %591 = vmatprep.subr.bf16.mxu1 %v635_v0  ;;  %v21_v1 = vld [vmem:[%s826_s0] sm:$0xff]  ;;  %v22_v2 = vld [vmem:[%s826_s0 + $0x8] sm:$0xff]  ;;  %v23_v6 = vld [vmem:[%s826_s0 + $0x10] sm:$0xff]  ;;  %vm35_vm1 = vcmask 523264  }
   0x2   :  { %v435_v3 = vld [vmem:[%s826_s0 + $0x40] sm:$0xff]  ;;  %v580_v4 = vpack.c.bf16 %v22_v2, %v21_v1  ;;  %v436_v5 = vld [vmem:[%s826_s0 + $0x48] sm:$0xff]  ;;  %v24_v7 = vld [vmem:[%s826_s0 + $0x18] sm:$0xff]  ;;  %519 = vmatprep.mubr.msk.f32.mxu0 %vm636_vm0, %v637_v8  ;;  %538 = vmatprep.mubr.msk.f32.mxu1 %vm636_vm0, %v637_v8 }
   0x3   :  { %v592_v9 = vpack.c.bf16 %v436_v5, %v435_v3  ;;  %v437_v10 = vld [vmem:[%s826_s0 + $0x50] sm:$0xff]  ;;  %v438_v11 = vld [vmem:[%s826_s0 + $0x58] sm:$0xff]  ;;  %631 = vset.pattern.permute.xlu0 %v638_v12  ;;  %632 = vset.pattern.permute.xlu1 %v638_v12  ;;  %v583_v13 = vpack.c.bf16 %v24_v7, %v23_v6  ;;  %v25_v15 = vld [vmem:[%s826_s0 + $0x20] sm:$0xff] }
   0x4   :  { %581 = vmatpush3.bf16.msra.mxu0 %v580_v4  ;;  %v595_v14 = vpack.c.bf16 %v438_v11, %v437_v10  ;;  %v26_v16 = vld [vmem:[%s826_s0 + $0x28] sm:$0xff]  ;;  %v439_v17 = vld [vmem:[%s826_s0 + $0x60] sm:$0xff]  ;;  %v27_v21 = vld [vmem:[%s826_s0 + $0x30] sm:$0xff] }
   0x5   :  { %593 = vmatpush3.bf16.msra.mxu1 %v592_v9  ;;  %582 = vmatprep.subr.bf16.mxu0 %v635_v0  ;;  %v440_v18 = vld [vmem:[%s826_s0 + $0x68] sm:$0xff]  ;;  %v586_v19 = vpack.c.bf16 %v26_v16, %v25_v15  ;;  %v28_v22 = vld [vmem:[%s826_s0 + $0x38] sm:$0xff]  ;;  %v441_v23 = vld [vmem:[%s826_s0 + $0x70] sm:$0xff] }
   0x6   :  { %594 = vmatprep.subr.bf16.mxu1 %v635_v0  ;;  %v598_v20 = vpack.c.bf16 %v440_v18, %v439_v17  ;;  %v442_v24 = vld [vmem:[%s826_s0 + $0x78] sm:$0xff]  ;;  %v589_v25 = vpack.c.bf16 %v28_v22, %v27_v21  ;;  %v445_v27 = vld [vmem:[%s826_s0 + $0x80] sm:$0xff]  ;;  %v446_v28 = vld [vmem:[%s826_s0 + $0x88] sm:$0xff] }
   0x7   :  { %v601_v26 = vpack.c.bf16 %v442_v24, %v441_v23  ;;  %v29_v29 = vld [vmem:[%s827_s2] sm:$0xff]  ;;  %v456_v31 = vld [vmem:[%s826_s0 + $0xc8] sm:$0xff]  ;;  %v604_v33 = vpack.c.bf16 %v446_v28, %v445_v27  ;;  %v447_v36 = vld [vmem:[%s826_s0 + $0x90] sm:$0xff] }
   0x8   :  { %584 = vmatpush3.bf16.msra.mxu0 %v583_v13  ;;  %v455_v30 = vld [vmem:[%s826_s0 + $0xc0] sm:$0xff]  ;;  %32 = vperm.xlu0 %631, %v29_v29   ;;  %v434_v34 = vld [vmem:[%s828_s1 + $0x8] sm:$0xff]  ;;  %v448_v37 = vld [vmem:[%s826_s0 + $0x98] sm:$0xff] }
   0x9   :  { %596 = vmatpush3.bf16.msra.mxu1 %v595_v14  ;;  %585 = vmatprep.subr.bf16.mxu0 %v635_v0  ;;  %v20_v32 = vld [vmem:[%s828_s1] sm:$0xff]  ;;  %v616_v35 = vpack.c.bf16 %v456_v31, %v455_v30  ;;  %v457_v38 = vld [vmem:[%s826_s0 + $0xd0] sm:$0xff]  ;;  %v458_v39 = vld [vmem:[%s826_s0 + $0xd8] sm:$0xff]  ;;  %v607_v40 = vpack.c.bf16 %v448_v37, %v447_v36 }
   0xa   :  { %597 = vmatprep.subr.bf16.mxu1 %v635_v0  ;;  %v619_v41 = vpack.c.bf16 %v458_v39, %v457_v38  ;;  %v449_v42 = vld [vmem:[%s826_s0 + $0xa0] sm:$0xff]  ;;  %v450_v43 = vld [vmem:[%s826_s0 + $0xa8] sm:$0xff]  ;;  %v451_v48 = vld [vmem:[%s826_s0 + $0xb0] sm:$0xff] }
   0xb   :  { %v459_v44 = vld [vmem:[%s826_s0 + $0xe0] sm:$0xff]  ;;  %v460_v45 = vld [vmem:[%s826_s0 + $0xe8] sm:$0xff]  ;;  %v610_v46 = vpack.c.bf16 %v450_v43, %v449_v42  ;;  %v452_v49 = vld [vmem:[%s826_s0 + $0xb8] sm:$0xff] }
   0xc   :  { %587 = vmatpush3.bf16.msra.mxu0 %v586_v19  ;;  %v622_v47 = vpack.c.bf16 %v460_v45, %v459_v44  ;;  %v461_v50 = vld [vmem:[%s826_s0 + $0xf0] sm:$0xff]  ;;  %v462_v51 = vld [vmem:[%s826_s0 + $0xf8] sm:$0xff]  ;;  %v613_v52 = vpack.c.bf16 %v452_v49, %v451_v48  ;;  %v393_v30 = vld [vmem:[%s829_s3] sm:$0xff] }
   0xd   :  { %599 = vmatpush3.bf16.msra.mxu1 %v598_v20  ;;  %588 = vmatprep.subr.bf16.mxu0 %v635_v0  ;;  %v625_v53 = vpack.c.bf16 %v462_v51, %v461_v50  ;;  %v444_v54 = vld [vmem:[%s828_s1 + $0x10] sm:$0xff]  ;;  %v454_v55 = vld [vmem:[%s828_s1 + $0x18] sm:$0xff] }
   0xe   :  { %600 = vmatprep.subr.bf16.mxu1 %v635_v0 }
  0x10   :  { %590 = vmatpush3.bf16.msra.mxu0 %v589_v25 }
  0x11   :  { %602 = vmatpush3.bf16.msra.mxu1 %v601_v26  ;;  %603 = vmatprep.subr.bf16.mxu0 %v635_v0 }
  0x12   :  { %615 = vmatprep.subr.bf16.mxu1 %v635_v0 }
  0x13   :  { %520 = vmatmul.mubr.msk.f32.vlgmr.msra.gmra.mrb[0].mxu0 %vm35_vm1, %v20_v32 }
  0x14   :  { %539 = vmatmul.mubr.msk.f32.vlgmr.msra.gmra.mrb[0].mxu1 %vm35_vm1, %v434_v34  ;;  %605 = vmatpush3.bf16.msra.mxu0 %v604_v33  ;;  %v397_v33 = vld [vmem:[%s830_s4] sm:$0xff] }
  0x15   :  { %617 = vmatpush3.bf16.msra.mxu1 %v616_v35  ;;  %606 = vmatprep.subr.bf16.mxu0 %v635_v0 }
  0x16   :  { %618 = vmatprep.subr.bf16.mxu1 %v635_v0  ;;  %557 = vmatprep.mubr.msk.f32.mxu0 %vm636_vm0, %v637_v8 }
  0x17   :  { %576 = vmatprep.mubr.msk.f32.mxu1 %vm636_vm0, %v637_v8 }
  0x18   :  { %608 = vmatpush3.bf16.msra.mxu0 %v607_v40 }
  0x19   :  { %620 = vmatpush3.bf16.msra.mxu1 %v619_v41  ;;  %609 = vmatprep.subr.bf16.mxu0 %v635_v0 }
  0x1a   :  { %621 = vmatprep.subr.bf16.mxu1 %v635_v0 }
  0x1c   :  { %611 = vmatpush3.bf16.msra.mxu0 %v610_v46 }
  0x1d   :  { %623 = vmatpush3.bf16.msra.mxu1 %v622_v47  ;;  %612 = vmatprep.subr.bf16.mxu0 %v635_v0 }
  0x1e   :  { %624 = vmatprep.subr.bf16.mxu1 %v635_v0 }
  0x20   :  { %614 = vmatpush3.bf16.msra.mxu0 %v613_v52 }
  0x21   :  { %626 = vmatpush3.bf16.msra.mxu1 %v625_v53 }
  0x23   :  { %558 = vmatmul.mubr.msk.f32.vlgmr.msra.gmra.mrb[2].mxu0 %vm35_vm1, %v444_v54 }
  0x24   :  { %577 = vmatmul.mubr.msk.f32.vlgmr.msra.gmra.mrb[2].mxu1 %vm35_vm1, %v454_v55 }
  0x87   :  { %v33_v56 = vpop.permute.xlu0 %32 }
  0xe6   :  { %v105_v57 = vpop.f32.mrb[0].mxu0 }
  0xe7   :  { %v521_v58 = vpop.f32.mrb[1].mxu0  ;;  %v189_v59 = vpop.f32.mrb[0].mxu1  ;;  %v106_v60 = vadd.f32 %v105_v57, %v33_v56 }
  0xe8   :  { %v190_v61 = vadd.f32 %v189_v59, %v33_v56  ;;  %v540_v62 = vpop.f32.mrb[1].mxu1 }
  0xe9   :  { %361 = vadd.xlane.f32.xlu0 %v106_v60 }
  0xea   :  { %363 = vadd.xlane.f32.xlu1 %v190_v61 }
  0xf6   :  { %v273_v63 = vpop.f32.mrb[2].mxu0 }
  0xf7   :  { %v274_v0 = vadd.f32 %v273_v63, %v33_v56  ;;  %v357_v1 = vpop.f32.mrb[2].mxu1  ;;  %v559_v2 = vpop.f32.mrb[3].mxu0 }
  0xf8   :  { %v578_v3 = vpop.f32.mrb[3].mxu1  ;;  %v358_v4 = vadd.f32 %v357_v1, %v33_v56 }
  0xf9   :  { %366 = vadd.xlane.f32.xlu1 %v274_v0 }
  0xfd   :  { %369 = vadd.xlane.f32.xlu1 %v358_v4 }
 0x176   :  { %v362_v6 = vpop.xlane.xlu0 %361 }
 0x177   :  { %v364_v5 = vpop.xlane.xlu1 %363 }
 0x178   :  { %v365_v8 = vadd.f32 %v364_v5, %v362_v6 }
 0x186   :  { %v367_v7 = vpop.xlane.xlu1 %366 }
 0x187   :  { %v368_v9 = vadd.f32 %v367_v7, %v365_v8 }
 0x18a   :  { %v370_v10 = vpop.xlane.xlu1 %369 }
 0x18b   :  { %v371_v11 = vadd.f32 %v370_v10, %v368_v9 }
 0x18d   :  { %v372_v12 = vmul.f32 0.001953125, %v371_v11 }
 0x18f   :  { %v373_v13 = vsub.f32 %v106_v60, %v372_v12  ;;  %v377_v15 = vsub.f32 %v190_v61, %v372_v12  ;;  %v382_v17 = vsub.f32 %v274_v0, %v372_v12  ;;  %v387_v19 = vsub.f32 %v358_v4, %v372_v12 }
 0x191   :  { %v374_v14 = vmul.f32 %v373_v13, %v373_v13  ;;  %v378_v16 = vmul.f32 %v377_v15, %v377_v15  ;;  %v383_v18 = vmul.f32 %v382_v17, %v382_v17  ;;  %v388_v20 = vmul.f32 %v387_v19, %v387_v19 }
 0x193   :  { %375 = vadd.xlane.f32.xlu1 %v374_v14 }
 0x197   :  { %379 = vadd.xlane.f32.xlu1 %v378_v16 }
 0x19b   :  { %384 = vadd.xlane.f32.xlu1 %v383_v18 }
 0x19f   :  { %389 = vadd.xlane.f32.xlu1 %v388_v20 }
 0x220   :  { %v376_v21 = vpop.xlane.xlu1 %375 }
 0x224   :  { %v380_v22 = vpop.xlane.xlu1 %379 }
 0x225   :  { %v381_v24 = vadd.f32 %v380_v22, %v376_v21 }
 0x228   :  { %v385_v23 = vpop.xlane.xlu1 %384 }
 0x229   :  { %v386_v25 = vadd.f32 %v385_v23, %v381_v24 }
 0x22c   :  { %v390_v26 = vpop.xlane.xlu1 %389 }
 0x22d   :  { %v391_v27 = vadd.f32 %v390_v26, %v386_v25 }
 0x22f   :  { %v392_v28 = vmul.f32 0.001953125, %v391_v27 }
 0x231   :  { %v394_v29 = vadd.f32 1e-05, %v392_v28 }
 0x233   :  { %633 = vrsqrt.f32 %v394_v29 }
 0x23d   :  { %v634_v31 = vpop.eup %633 }
 0x23e   :  { %v396_v32 = vmul.f32 %v634_v31, %v393_v30 }
 0x240   :  { %402 = vperm.xlu1 %632, %v396_v32   ;;  %v398_v34 = vmul.f32 %v396_v32, %v372_v12 }
 0x242   :  { %v399_v35 = vsub.f32 %v397_v33, %v398_v34 }
 0x244   :  { %408 = vperm.xlu0 %631, %v399_v35  }
 0x2bf   :  { %v403_v36 = vpop.permute.xlu1 %402 }
 0x2c0   :  { %v405_v37 = vmul.f32 %v403_v36, %v106_v60  ;;  %v412_v38 = vmul.f32 %v403_v36, %v190_v61  ;;  %v414_v39 = vmul.f32 %v403_v36, %v274_v0  ;;  %v416_v40 = vmul.f32 %v403_v36, %v358_v4 }
 0x2c3   :  { %v409_v41 = vpop.permute.xlu0 %408 }
 0x2c4   :  { %v411_v42 = vadd.f32 %v409_v41, %v405_v37  ;;  %v413_v43 = vadd.f32 %v412_v38, %v409_v41  ;;  %v415_v44 = vadd.f32 %v414_v39, %v409_v41  ;;  %v417_v45 = vadd.f32 %v416_v40, %v409_v41 }
 0x2c6   :  { %v418_v46 = vmax.f32 %v411_v42, 0.0  ;;  %v419_v47 = vmax.f32 %v413_v43, 0.0  ;;  %v420_v48 = vmax.f32 %v415_v44, 0.0  ;;  %v421_v49 = vmax.f32 %v417_v45, 0.0 }
 0x2c8   :  { %422 = vst [vmem:[%s831_s5] sm:$0xff] %v418_v46  ;;  %464 = vst [vmem:[%s831_s5 + $0x8] sm:$0xff] %v419_v47 }
 0x2c9   :  { %465 = vst [vmem:[%s831_s5 + $0x10] sm:$0xff] %v420_v48  ;;  %466 = vst [vmem:[%s831_s5 + $0x18] sm:$0xff] %v421_v49 }

// kernel: generator_forward.7
= control target key start
LH: loop header
LB: loop body
LE: loop exit
PB: predicated region body
PF: predicated region fallthrough
CT: control target
= control target key end

     0   :  { %v1000_v2 = vmov 0.0   ;;  %v1001_v7 = vmov 0   ;;  %vm53_vm0 = vcmask 261120   ;;  %s1312_s0 = inlined_call_operand.vmem [shape: f32[4,32,512], index: 0, kind: input, shape index: {}]   ;;  %s1313_s3 = inlined_call_operand.<no memory space> [shape: f32[1,1], index: 3, kind: input, shape index: {}]   ;;  %s1314_s4 = inlined_call_operand.<no memory space> [shape: f32[1,1], index: 4, kind: input, shape index: {}]   ;;  %s1315_s2 = inlined_call_operand.<no memory space> [shape: f32[1,1], index: 2, kind: input, shape index: {}]   ;;  %s1316_s1 = inlined_call_operand.vmem [shape: f32[4,1,32], index: 1, kind: input, shape index: {}]   ;;  %s1317_s5 = inlined_call_operand.vmem [shape: f32[4,1,512], index: 5, kind: output, shape index: {}]  }
   0x1   :  { %v28_v0 = vld [vmem:[%s1312_s0 + $0x8] sm:$0xff]  ;;  %121 = vmatprep.mubr.f32.mxu0 %v1000_v2  ;;  %192 = vmatprep.mubr.f32.mxu1 %v1000_v2  ;;  %v30_v4 = vld [vmem:[%s1312_s0 + $0x18] sm:$0xff]  ;;  %v27_v6 = vld [vmem:[%s1312_s0] sm:$0xff]  ;;  %v10_v8 = vstv %s1315_s2 }
   0x2   :  { %v32_v1 = vld [vmem:[%s1312_s0 + $0x28] sm:$0xff]  ;;  %v34_v5 = vld [vmem:[%s1312_s0 + $0x38] sm:$0xff]  ;;  %967 = vset.pattern.permute.xlu0 %v1001_v7  ;;  %v31_v10 = vld [vmem:[%s1312_s0 + $0x20] sm:$0xff]  ;;  %11 = vst [vmem:[#allocation2] sm:$0x1] %v10_v8 }
   0x3   :  { %v900_v3 = vpack.c.bf16 %v32_v1, %v28_v0  ;;  %v908_v9 = vpack.c.bf16 %v34_v5, %v30_v4  ;;  %v29_v11 = vld [vmem:[%s1312_s0 + $0x10] sm:$0xff]  ;;  %v902_v13 = vpack.c.bf16 %v31_v10, %v27_v6  ;;  %v36_v15 = vld [vmem:[%s1312_s0 + $0x48] sm:$0xff]  ;;  %v38_v17 = vld [vmem:[%s1312_s0 + $0x58] sm:$0xff] }
   0x4   :  { %v33_v12 = vld [vmem:[%s1312_s0 + $0x30] sm:$0xff]  ;;  %v40_v16 = vld [vmem:[%s1312_s0 + $0x68] sm:$0xff]  ;;  %v42_v19 = vld [vmem:[%s1312_s0 + $0x78] sm:$0xff] }
   0x5   :  { %901 = vmatprep.subr.bf16.mxu0 %v900_v3  ;;  %v910_v14 = vpack.c.bf16 %v33_v12, %v29_v11  ;;  %909 = vmatprep.subr.bf16.mxu1 %v908_v9  ;;  %v904_v18 = vpack.c.bf16 %v40_v16, %v36_v15  ;;  %v35_v20 = vld [vmem:[%s1312_s0 + $0x40] sm:$0xff]  ;;  %v912_v22 = vpack.c.bf16 %v42_v19, %v38_v17  ;;  %v37_v24 = vld [vmem:[%s1312_s0 + $0x50] sm:$0xff]  ;;  %v842_v27 = vld [vmem:[%s1312_s0 + $0x88] sm:$0xff] }
   0x6   :  { %v39_v21 = vld [vmem:[%s1312_s0 + $0x60] sm:$0xff]  ;;  %903 = vmatpush1.bf16.msra.mxu0 %v902_v13  ;;  %v41_v25 = vld [vmem:[%s1312_s0 + $0x70] sm:$0xff]  ;;  %v846_v28 = vld [vmem:[%s1312_s0 + $0xa8] sm:$0xff] }
   0x7   :  { %911 = vmatpush1.bf16.msra.mxu1 %v910_v14  ;;  %v906_v23 = vpack.c.bf16 %v39_v21, %v35_v20  ;;  %905 = vmatprep.subr.bf16.mxu0 %v904_v18  ;;  %v914_v26 = vpack.c.bf16 %v41_v25, %v37_v24  ;;  %v844_v29 = vld [vmem:[%s1312_s0 + $0x98] sm:$0xff]  ;;  %v26_v30 = vld [vmem:[%s1316_s1] sm:$0x1]  ;;  %v916_v31 = vpack.c.bf16 %v846_v28, %v842_v27  ;;  %v843_v36 = vld [vmem:[%s1312_s0 + $0x90] sm:$0xff] }
   0x8   :  { %913 = vmatprep.subr.bf16.mxu1 %v912_v22  ;;  %v848_v32 = vld [vmem:[%s1312_s0 + $0xb8] sm:$0xff]  ;;  %v841_v33 = vld [vmem:[%s1312_s0 + $0x80] sm:$0xff]  ;;  %v847_v37 = vld [vmem:[%s1312_s0 + $0xb0] sm:$0xff] }
   0x9   :  { %v845_v34 = vld [vmem:[%s1312_s0 + $0xa0] sm:$0xff]  ;;  %v924_v35 = vpack.c.bf16 %v848_v32, %v844_v29  ;;  %v850_v38 = vld [vmem:[%s1312_s0 + $0xc8] sm:$0xff]  ;;  %v926_v40 = vpack.c.bf16 %v847_v37, %v843_v36  ;;  %v852_v42 = vld [vmem:[%s1312_s0 + $0xd8] sm:$0xff] }
   0xa   :  { %907 = vmatpush1.bf16.msra.mxu0 %v906_v23  ;;  %v918_v39 = vpack.c.bf16 %v845_v34, %v841_v33  ;;  %v854_v41 = vld [vmem:[%s1312_s0 + $0xe8] sm:$0xff]  ;;  %v856_v43 = vld [vmem:[%s1312_s0 + $0xf8] sm:$0xff]  ;;  %v849_v46 = vld [vmem:[%s1312_s0 + $0xc0] sm:$0xff] }
   0xb   :  { %915 = vmatpush1.bf16.msra.mxu1 %v914_v26  ;;  %917 = vmatprep.subr.bf16.mxu0 %v916_v31  ;;  %v920_v44 = vpack.c.bf16 %v854_v41, %v850_v38  ;;  %v928_v45 = vpack.c.bf16 %v856_v43, %v852_v42  ;;  %v853_v47 = vld [vmem:[%s1312_s0 + $0xe0] sm:$0xff]  ;;  %v851_v48 = vld [vmem:[%s1312_s0 + $0xd0] sm:$0xff]  ;;  %v861_v50 = vld [vmem:[%s1312_s0 + $0x108] sm:$0xff]  ;;  %v49_v41 = vlaneseq }
   0xc   :  { %925 = vmatprep.subr.bf16.mxu1 %v924_v35  ;;  %v855_v49 = vld [vmem:[%s1312_s0 + $0xf0] sm:$0xff]  ;;  %v865_v51 = vld [vmem:[%s1312_s0 + $0x128] sm:$0xff]  ;;  %v863_v52 = vld [vmem:[%s1312_s0 + $0x118] sm:$0xff]  ;;  %v922_v54 = vpack.c.bf16 %v853_v47, %v849_v46 }
   0xd   :  { %838 = vmatmul.mubr.msk.f32.vlgmr.msra.gmra.mrb[0].mxu0 %vm53_vm0, %v26_v30  ;;  %v867_v53 = vld [vmem:[%s1312_s0 + $0x138] sm:$0xff]  ;;  %v930_v55 = vpack.c.bf16 %v855_v49, %v851_v48  ;;  %v860_v56 = vld [vmem:[%s1312_s0 + $0x100] sm:$0xff]  ;;  %v932_v58 = vpack.c.bf16 %v865_v51, %v861_v50  ;;  %v862_v60 = vld [vmem:[%s1312_s0 + $0x110] sm:$0xff]  ;;  %v50_v42 = vshrl.u32 %v49_v41, 7  ;;  %vm1274_vm1 = vcmp.lt.s32.totalorder %v49_v41, 512 }
   0xe   :  { %839 = vmatmul.mubr.msk.f32.vlgmr.msra.gmra.mrb[0].mxu1 %vm53_vm0, %v26_v30  ;;  %919 = vmatpush1.bf16.msra.mxu0 %v918_v39  ;;  %v864_v57 = vld [vmem:[%s1312_s0 + $0x120] sm:$0xff]  ;;  %v940_v59 = vpack.c.bf16 %v867_v53, %v863_v52  ;;  %v866_v61 = vld [vmem:[%s1312_s0 + $0x130] sm:$0xff]  ;;  %v869_v62 = vld [vmem:[%s1312_s0 + $0x148] sm:$0xff]  ;;  %v1002_v53 = vmov 1966171168  }
   0xf   :  { %927 = vmatpush1.bf16.msra.mxu1 %v926_v40  ;;  %921 = vmatprep.subr.bf16.mxu0 %v920_v44  ;;  %v873_v63 = vld [vmem:[%s1312_s0 + $0x168] sm:$0xff]  ;;  %v871_v0 = vld [vmem:[%s1312_s0 + $0x158] sm:$0xff]  ;;  %v840_v3 = vld [vmem:[%s1316_s1 + $0x1] sm:$0x1]  ;;  %v934_v4 = vpack.c.bf16 %v864_v57, %v860_v56  ;;  %v942_v5 = vpack.c.bf16 %v866_v61, %v862_v60  ;;  %v51_v43 = vsub.s32 0, %v50_v42 }
  0x10   :  { %929 = vmatprep.subr.bf16.mxu1 %v928_v45  ;;  %285 = vmatprep.mubr.f32.mxu0 %v1000_v2  ;;  %v875_v1 = vld [vmem:[%s1312_s0 + $0x178] sm:$0xff]  ;;  %v868_v6 = vld [vmem:[%s1312_s0 + $0x140] sm:$0xff]  ;;  %v936_v8 = vpack.c.bf16 %v873_v63, %v869_v62  ;;  %v870_v10 = vld [vmem:[%s1312_s0 + $0x150] sm:$0xff] }
  0x11   :  { %356 = vmatprep.mubr.f32.mxu1 %v1000_v2  ;;  %v872_v7 = vld [vmem:[%s1312_s0 + $0x160] sm:$0xff]  ;;  %v944_v9 = vpack.c.bf16 %v875_v1, %v871_v0  ;;  %v874_v11 = vld [vmem:[%s1312_s0 + $0x170] sm:$0xff]  ;;  %v880_v12 = vld [vmem:[%s1312_s0 + $0x188] sm:$0xff] }
  0x12   :  { %923 = vmatpush1.bf16.msra.mxu0 %v922_v54  ;;  %v884_v13 = vld [vmem:[%s1312_s0 + $0x1a8] sm:$0xff]  ;;  %v882_v14 = vld [vmem:[%s1312_s0 + $0x198] sm:$0xff]  ;;  %v938_v16 = vpack.c.bf16 %v872_v7, %v868_v6  ;;  %v946_v17 = vpack.c.bf16 %v874_v11, %v870_v10  ;;  %v879_v18 = vld [vmem:[%s1312_s0 + $0x180] sm:$0xff]  ;;  %v714_v54 = vunpack.c.l.s4 %v1002_v53 }
  0x13   :  { %931 = vmatpush1.bf16.msra.mxu1 %v930_v55  ;;  %933 = vmatprep.subr.bf16.mxu0 %v932_v58  ;;  %v886_v15 = vld [vmem:[%s1312_s0 + $0x1b8] sm:$0xff]  ;;  %v883_v19 = vld [vmem:[%s1312_s0 + $0x1a0] sm:$0xff]  ;;  %v881_v20 = vld [vmem:[%s1312_s0 + $0x190] sm:$0xff]  ;;  %v948_v21 = vpack.c.bf16 %v884_v13, %v880_v12 }
  0x14   :  { %941 = vmatprep.subr.bf16.mxu1 %v940_v59  ;;  %v956_v22 = vpack.c.bf16 %v886_v15, %v882_v14  ;;  %v885_v23 = vld [vmem:[%s1312_s0 + $0x1b0] sm:$0xff]  ;;  %v888_v24 = vld [vmem:[%s1312_s0 + $0x1c8] sm:$0xff]  ;;  %v890_v26 = vld [vmem:[%s1312_s0 + $0x1d8] sm:$0xff]  ;;  %v950_v30 = vpack.c.bf16 %v883_v19, %v879_v18  ;;  %v715_v61 = vunpack.c.0.s8 %v714_v54 }
  0x15   :  { %857 = vmatmul.mubr.msk.f32.vlgmr.msra.gmra.mrb[2].mxu0 %vm53_vm0, %v840_v3  ;;  %v892_v25 = vld [vmem:[%s1312_s0 + $0x1e8] sm:$0xff]  ;;  %v894_v27 = vld [vmem:[%s1312_s0 + $0x1f8] sm:$0xff]  ;;  %v43_v28 = vld [vmem:[#allocation2] sm:$0x1]  ;;  %v958_v31 = vpack.c.bf16 %v885_v23, %v881_v20 }
  0x16   :  { %858 = vmatmul.mubr.msk.f32.vlgmr.msra.gmra.mrb[2].mxu1 %vm53_vm0, %v840_v3  ;;  %935 = vmatpush1.bf16.msra.mxu0 %v934_v4  ;;  %v859_v29 = vld [vmem:[%s1316_s1 + $0x2] sm:$0x1]  ;;  %v952_v33 = vpack.c.bf16 %v892_v25, %v888_v24  ;;  %v960_v34 = vpack.c.bf16 %v894_v27, %v890_v26  ;;  %v889_v36 = vld [vmem:[%s1312_s0 + $0x1d0] sm:$0xff]  ;;  %v878_v40 = vld [vmem:[%s1316_s1 + $0x3] sm:$0x1]  ;;  %v1266_v3 = vsub.s32 %v715_v61, %v50_v42 }
  0x17   :  { %943 = vmatpush1.bf16.msra.mxu1 %v942_v5  ;;  %937 = vmatprep.subr.bf16.mxu0 %v936_v8  ;;  %v887_v32 = vld [vmem:[%s1312_s0 + $0x1c0] sm:$0xff]  ;;  %v893_v37 = vld [vmem:[%s1312_s0 + $0x1f0] sm:$0xff] }
  0x18   :  { %945 = vmatprep.subr.bf16.mxu1 %v944_v9  ;;  %449 = vmatprep.mubr.f32.mxu0 %v1000_v2  ;;  %v891_v35 = vld [vmem:[%s1312_s0 + $0x1e0] sm:$0xff]  ;;  %v962_v39 = vpack.c.bf16 %v893_v37, %v889_v36 }
  0x19   :  { %520 = vmatprep.mubr.f32.mxu1 %v1000_v2  ;;  %46 = vperm.xlu0 %967, %v43_v28   ;;  %v954_v38 = vpack.c.bf16 %v891_v35, %v887_v32 }
  0x1a   :  { %939 = vmatpush1.bf16.msra.mxu0 %v938_v16 }
  0x1b   :  { %947 = vmatpush1.bf16.msra.mxu1 %v946_v17  ;;  %949 = vmatprep.subr.bf16.mxu0 %v948_v21 }
  0x1c   :  { %957 = vmatprep.subr.bf16.mxu1 %v956_v22 }
  0x1d   :  { %876 = vmatmul.mubr.msk.f32.vlgmr.msra.gmra.mrb[4].mxu0 %vm53_vm0, %v859_v29 }
  0x1e   :  { %877 = vmatmul.mubr.msk.f32.vlgmr.msra.gmra.mrb[4].mxu1 %vm53_vm0, %v859_v29  ;;  %951 = vmatpush1.bf16.msra.mxu0 %v950_v30 }
  0x1f   :  { %959 = vmatpush1.bf16.msra.mxu1 %v958_v31  ;;  %953 = vmatprep.subr.bf16.mxu0 %v952_v33 }
  0x20   :  { %961 = vmatprep.subr.bf16.mxu1 %v960_v34  ;;  %613 = vmatprep.mubr.f32.mxu0 %v1000_v2 }
  0x21   :  { %684 = vmatprep.mubr.f32.mxu1 %v1000_v2 }
  0x22   :  { %955 = vmatpush1.bf16.msra.mxu0 %v954_v38 }
  0x23   :  { %963 = vmatpush1.bf16.msra.mxu1 %v962_v39 }
  0x25   :  { %895 = vmatmul.mubr.msk.f32.vlgmr.msra.gmra.mrb[6].mxu0 %vm53_vm0, %v878_v40 }
  0x26   :  { %896 = vmatmul.mubr.msk.f32.vlgmr.msra.gmra.mrb[6].mxu1 %vm53_vm0, %v878_v40 }
  0x98   :  { %v47_v44 = vpop.permute.xlu0 %46 }
  0x99   :  { %v1256_v45 = vrot.slane %v47_v44, %v51_v43 }
  0xe0   :  { %v123_v46 = vpop.f32.mrb[0].mxu0 }
  0xe1   :  { %v194_v47 = vpop.f32.mrb[0].mxu1  ;;  %v124_v2 = vadd.f32 %v123_v46, %v1256_v45  ;;  %v125_v49 = vpop.f32.mrb[1].mxu0 }
  0xe2   :  { %v195_v48 = vadd.f32 %v194_v47, %v1256_v45  ;;  %v196_v50 = vpop.f32.mrb[1].mxu1  ;;  %v126_v51 = vadd.f32 %v125_v49, %v1256_v45 }
  0xe3   :  { %v197_v52 = vadd.f32 %v196_v50, %v1256_v45  ;;  %968 = vtanh.f32 %v124_v2 }
  0xe4   :  { %970 = vtanh.f32 %v195_v48 }
  0xe5   :  { %972 = vtanh.f32 %v126_v51 }
  0xe6   :  { %974 = vtanh.f32 %v197_v52 }
  0xe8   :  { %v287_v55 = vpop.f32.mrb[2].mxu0 }
  0xe9   :  { %v358_v56 = vpop.f32.mrb[2].mxu1  ;;  %v288_v57 = vadd.f32 %v287_v55, %v1256_v45  ;;  %v289_v59 = vpop.f32.mrb[3].mxu0 }
  0xea   :  { %v359_v58 = vadd.f32 %v358_v56, %v1256_v45  ;;  %v360_v60 = vpop.f32.mrb[3].mxu1  ;;  %v290_v62 = vadd.f32 %v289_v59, %v1256_v45 }
  0xeb   :  { %v361_v63 = vadd.f32 %v360_v60, %v1256_v45  ;;  %976 = vtanh.f32 %v288_v57 }
  0xec   :  { %978 = vtanh.f32 %v359_v58 }
  0xed   :  { %v969_v0 = vpop.eup %968  ;;  %980 = vtanh.f32 %v290_v62 }
  0xee   :  { %v971_v1 = vpop.eup %970  ;;  %982 = vtanh.f32 %v361_v63 }
  0xef   :  { %v973_v4 = vpop.eup %972 }
  0xf0   :  { %v975_v5 = vpop.eup %974  ;;  %v711_v6 = vcombine.low %v969_v0, %v973_v4  ;;  %v451_v7 = vpop.f32.mrb[4].mxu0 }
  0xf1   :  { %v522_v8 = vpop.f32.mrb[4].mxu1  ;;  %v712_v9 = vcombine.low %v971_v1, %v975_v5  ;;  %v452_v10 = vadd.f32 %v451_v7, %v1256_v45  ;;  %v453_v12 = vpop.f32.mrb[5].mxu0 }
  0xf2   :  { %v523_v11 = vadd.f32 %v522_v8, %v1256_v45  ;;  %v524_v13 = vpop.f32.mrb[5].mxu1  ;;  %v719_v14 = vrot.slane %v711_v6, %v1266_v3  ;;  %v454_v15 = vadd.f32 %v453_v12, %v1256_v45 }
  0xf3   :  { %v525_v16 = vadd.f32 %v524_v13, %v1256_v45  ;;  %v726_v17 = vrot.slane %v712_v9, %v1266_v3  ;;  %984 = vtanh.f32 %v452_v10 }
  0xf4   :  { %986 = vtanh.f32 %v523_v11 }
  0xf5   :  { %v977_v18 = vpop.eup %976  ;;  %v727_v19 = vcombine.low %v719_v14, %v726_v17  ;;  %988 = vtanh.f32 %v454_v15 }
  0xf6   :  { %v979_v20 = vpop.eup %978  ;;  %990 = vtanh.f32 %v525_v16 }
  0xf7   :  { %v981_v22 = vpop.eup %980  ;;  %v734_v23 = vrot.slane %v727_v19, %v1266_v3 }
  0xf8   :  { %v983_v24 = vpop.eup %982  ;;  %v745_v25 = vcombine.low %v977_v18, %v981_v22  ;;  %v615_v26 = vpop.f32.mrb[6].mxu0 }
  0xf9   :  { %v686_v27 = vpop.f32.mrb[6].mxu1  ;;  %740 = vst.msk [vmem:[%s1317_s5] sm:$0xf] %vm1274_vm1, %v734_v23  ;;  %v746_v28 = vcombine.low %v979_v20, %v983_v24  ;;  %v616_v29 = vadd.f32 %v615_v26, %v1256_v45  ;;  %v617_v31 = vpop.f32.mrb[7].mxu0 }
  0xfa   :  { %v687_v30 = vadd.f32 %v686_v27, %v1256_v45  ;;  %v688_v32 = vpop.f32.mrb[7].mxu1  ;;  %v753_v33 = vrot.slane %v745_v25, %v1266_v3  ;;  %v618_v34 = vadd.f32 %v617_v31, %v1256_v45 }
  0xfb   :  { %v689_v35 = vadd.f32 %v688_v32, %v1256_v45  ;;  %v760_v36 = vrot.slane %v746_v28, %v1266_v3  ;;  %992 = vtanh.f32 %v616_v29 }
  0xfc   :  { %994 = vtanh.f32 %v687_v30 }
  0xfd   :  { %v985_v37 = vpop.eup %984  ;;  %v761_v38 = vcombine.low %v753_v33, %v760_v36  ;;  %996 = vtanh.f32 %v618_v34 }
  0xfe   :  { %v987_v39 = vpop.eup %986  ;;  %998 = vtanh.f32 %v689_v35 }
  0xff   :  { %v989_v40 = vpop.eup %988  ;;  %v768_v41 = vrot.slane %v761_v38, %v1266_v3 }
 0x100   :  { %v991_v42 = vpop.eup %990  ;;  %v776_v43 = vcombine.low %v985_v37, %v989_v40 }
 0x101   :  { %897 = vst.msk [vmem:[%s1317_s5 + $0x4] sm:$0xf] %vm1274_vm1, %v768_v41  ;;  %v777_v44 = vcombine.low %v987_v39, %v991_v42 }
 0x102   :  { %v784_v45 = vrot.slane %v776_v43, %v1266_v3 }
 0x103   :  { %v791_v46 = vrot.slane %v777_v44, %v1266_v3 }
 0x105   :  { %v993_v47 = vpop.eup %992  ;;  %v792_v2 = vcombine.low %v784_v45, %v791_v46 }
 0x106   :  { %v995_v48 = vpop.eup %994 }
 0x107   :  { %v997_v49 = vpop.eup %996  ;;  %v799_v50 = vrot.slane %v792_v2, %v1266_v3 }
 0x108   :  { %v999_v51 = vpop.eup %998  ;;  %v807_v52 = vcombine.low %v993_v47, %v997_v49 }
 0x109   :  { %898 = vst.msk [vmem:[%s1317_s5 + $0x8] sm:$0xf] %vm1274_vm1, %v799_v50  ;;  %v808_v53 = vcombine.low %v995_v48, %v999_v51 }
 0x10a   :  { %v815_v54 = vrot.slane %v807_v52, %v1266_v3 }
 0x10b   :  { %v822_v55 = vrot.slane %v808_v53, %v1266_v3 }
 0x10d   :  { %v823_v56 = vcombine.low %v815_v54, %v822_v55 }
 0x10f   :  { %v830_v57 = vrot.slane %v823_v56, %v1266_v3 }
 0x111   :  { %899 = vst.msk [vmem:[%s1317_s5 + $0xc] sm:$0xf] %vm1274_vm1, %v830_v57 }

</bundles_post_ra>
